<compile_context>
chip_gen: v7x
topology: tpu7x:2x2x1
jax: 0.10.0
libtpu: 0.0.40
codegen_flags: <defaults>
</compile_context>

<pallas_src>
import functools
import math

import jax
import jax.numpy as jnp
from jax import lax
from jax.experimental import pallas as pl
from jax.experimental.pallas import tpu as pltpu

# ---- small synthetic config (DistilBERT-shaped, scaled down) ----
VOCAB = 100
MAX_POS = 16
HIDDEN = 32
N_HEADS = 4
HEAD_DIM = HIDDEN // N_HEADS
FFN = 64
N_LAYERS = 2
LN_EPS = 1e-12

PACK_W = 3 * HIDDEN        # width of the packed per-layer vector array (>= FFN)
N_VEC = 8                  # bqkv, bo, b1, b2, g1, be1, g2, be2


def _layernorm(x, g, b):
    mu = jnp.mean(x, axis=-1, keepdims=True)
    var = jnp.mean((x - mu) ** 2, axis=-1, keepdims=True)
    return (x - mu) * lax.rsqrt(var + LN_EPS) * g + b


# ---------------- fused encoder kernel ----------------

def encoder_kernel(x_emb_ref, mask_ref, emb_ln_ref, wqkv_ref, wo_ref, w1_ref,
                   w2_ref, vec_ref, o_ref, x_vmem, *, bblk, seq):
    l = pl.program_id(1)

    # Layer 0: build the resident hidden state = LayerNorm(word_emb + pos_emb).
    @pl.when(l == 0)
    def _():
        x_vmem[...] = _layernorm(x_emb_ref[...].astype(jnp.float32),
                                 emb_ln_ref[0:1, :], emb_ln_ref[1:2, :])

    x = x_vmem[...]                                    # (bblk*seq, H) f32, resident
    x16 = x.astype(jnp.bfloat16)

    # Packed per-layer vectors (ONE DMA per grid step).
    bqkv = vec_ref[0:1, :]                             # (1, 3H)
    bo = vec_ref[1:2, 0:HIDDEN]
    b1 = vec_ref[2:3, 0:FFN]
    b2 = vec_ref[3:4, 0:HIDDEN]
    g1 = vec_ref[4:5, 0:HIDDEN]
    be1 = vec_ref[5:6, 0:HIDDEN]
    g2 = vec_ref[6:7, 0:HIDDEN]
    be2 = vec_ref[7:8, 0:HIDDEN]

    # ---- multi-head attention ----
    # Single lane-dense QKV projection (1/sqrt(HEAD_DIM) folded into Wq/bq).
    qkv = jnp.dot(x16, wqkv_ref[...],
                  preferred_element_type=jnp.float32) + bqkv   # (bblk*seq, 3H)

    mbias = mask_ref[...]                              # (bblk, seq) additive key bias
    ctx_rows = []
    for b in range(bblk):                              # static, small (1 or 2)
        r0 = b * seq
        mb = mbias[b:b + 1, :]                         # (1, seq)
        heads = []
        for h in range(N_HEADS):                       # per-head (seq, HD) slices
            c = h * HEAD_DIM
            q = qkv[r0:r0 + seq, c:c + HEAD_DIM].astype(jnp.bfloat16)
            k = qkv[r0:r0 + seq, HIDDEN + c:HIDDEN + c + HEAD_DIM].astype(jnp.bfloat16)
            v = qkv[r0:r0 + seq,
                    2 * HIDDEN + c:2 * HIDDEN + c + HEAD_DIM].astype(jnp.bfloat16)
            s = lax.dot_general(q, k, (((1,), (1,)), ((), ())),
                                preferred_element_type=jnp.float32)   # (seq, seq)
            s = s + mb
            s = s - jnp.max(s, axis=-1, keepdims=True)
            p = jnp.exp(s)
            p = p * pl.reciprocal(jnp.sum(p, axis=-1, keepdims=True), approx=True)
            heads.append(jnp.dot(p.astype(jnp.bfloat16), v,
                                 preferred_element_type=jnp.float32))  # (seq, HD)
        ctx_rows.append(jnp.concatenate(heads, axis=-1))               # (seq, H)
    ctx = ctx_rows[0] if bblk == 1 else jnp.concatenate(ctx_rows, axis=0)

    # Output projection: one lane-dense (bblk*seq, H) @ (H, H) matmul.
    attn = jnp.dot(ctx.astype(jnp.bfloat16), wo_ref[...],
                   preferred_element_type=jnp.float32) + bo

    h1 = _layernorm(x + attn, g1, be1)

    # ---- FFN ----
    f = jnp.dot(h1.astype(jnp.bfloat16), w1_ref[...],
                preferred_element_type=jnp.float32) + b1
    # TODO(synk): HF DistilBERT uses exact (erf-based) GELU; tanh-approx GELU here.
    f = jax.nn.gelu(f, approximate=True)
    f = jnp.dot(f.astype(jnp.bfloat16), w2_ref[...],
                preferred_element_type=jnp.float32) + b2
    x_new = _layernorm(h1 + f, g2, be2)
    x_vmem[...] = x_new

    # Last layer: emit the CLS row (target_token_idx = 0) of every example in the
    # block as one (bblk, H) store.
    @pl.when(l == pl.num_programs(1) - 1)
    def _():
        if bblk == 1:
            cls = x_new[0:1, :]
        else:
            cls = jnp.concatenate(
                [x_new[b * seq:b * seq + 1, :] for b in range(bblk)], axis=0)
        o_ref[...] = cls.astype(o_ref.dtype)


# ---------------- pallas_call wrapper ----------------

def run_encoder(x_emb, mask_bias, params):
    B, S, H = x_emb.shape
    # Batch blocking: one big block streams weights once per layer (best on the
    # single-TC v5e/v6e); for B >= 4 keep 2 blocks so v7x's two TCs both get work.
    n_blocks = 2 if B >= 4 else 1
    assert B % n_blocks == 0
    bblk = B // n_blocks

    x_flat = x_emb.reshape(n_blocks, bblk * S, H)
    mask_b = mask_bias.reshape(n_blocks, bblk, S)
    wqkv, wo, w1, w2, vecs = params["layers"]
    emb_ln = params["emb_ln"]

    kernel = functools.partial(encoder_kernel, bblk=bblk, seq=S)

    in_specs = [
        pl.BlockSpec((None, bblk * S, H), lambda bb, l: (bb, 0, 0)),      # embeddings
        pl.BlockSpec((None, bblk, S), lambda bb, l: (bb, 0, 0)),          # mask bias
        pl.BlockSpec((2, H), lambda bb, l: (0, 0)),                       # emb LN g/b
        pl.BlockSpec((None, H, 3 * H), lambda bb, l: (l, 0, 0)),          # Wqkv
        pl.BlockSpec((None, H, H), lambda bb, l: (l, 0, 0)),              # Wo
        pl.BlockSpec((None, H, FFN), lambda bb, l: (l, 0, 0)),            # W1
        pl.BlockSpec((None, FFN, H), lambda bb, l: (l, 0, 0)),            # W2
        pl.BlockSpec((None, N_VEC, PACK_W), lambda bb, l: (l, 0, 0)),     # packed vecs
    ]
    # TODO(synk): at real DistilBERT sizes (H=768, FFN=3072, S=512) tile the FFN
    # matmuls over the 3072 axis and set vmem_limit_bytes explicitly (v7x: 64 MiB).
    out = pl.pallas_call(
        kernel,
        grid=(n_blocks, N_LAYERS),
        in_specs=in_specs,
        out_specs=pl.BlockSpec((None, bblk, H), lambda bb, l: (bb, 0, 0)),
        out_shape=jax.ShapeDtypeStruct((n_blocks, bblk, H), jnp.float32),
        scratch_shapes=[pltpu.VMEM((bblk * S, H), jnp.float32)],
        compiler_params=pltpu.CompilerParams(
            dimension_semantics=("parallel", "arbitrary")),
    )(x_flat, mask_b, emb_ln, wqkv, wo, w1, w2, vecs)
    return out.reshape(B, H)


# ---------------- parameters & forward ----------------

def init_params(key):
    keys = jax.random.split(key, 2 + N_LAYERS)
    scale = 0.02
    params = {
        "word_emb": scale * jax.random.normal(keys[0], (VOCAB, HIDDEN), jnp.float32),
        "pos_emb": scale * jax.random.normal(keys[1], (MAX_POS, HIDDEN), jnp.float32),
        "emb_ln": jnp.stack([jnp.ones((HIDDEN,), jnp.float32),
                             jnp.zeros((HIDDEN,), jnp.float32)]),   # rows: gamma, beta
    }
    inv_sqrt_hd = 1.0 / math.sqrt(HEAD_DIM)

    def pad_row(v):
        return jnp.pad(v, (0, PACK_W - v.shape[0]))

    wqkv_l, wo_l, w1_l, w2_l, vec_l = [], [], [], [], []
    for li in range(N_LAYERS):
        lk = jax.random.split(keys[2 + li], 6)
        wq = scale * jax.random.normal(lk[0], (HIDDEN, HIDDEN), jnp.float32)
        wk = scale * jax.random.normal(lk[1], (HIDDEN, HIDDEN), jnp.float32)
        wv = scale * jax.random.normal(lk[2], (HIDDEN, HIDDEN), jnp.float32)
        wo = scale * jax.random.normal(lk[3], (HIDDEN, HIDDEN), jnp.float32)
        w1 = scale * jax.random.normal(lk[4], (HIDDEN, FFN), jnp.float32)
        w2 = scale * jax.random.normal(lk[5], (FFN, HIDDEN), jnp.float32)

        bq = jnp.zeros((HIDDEN,), jnp.float32)
        bk = jnp.zeros((HIDDEN,), jnp.float32)
        bv = jnp.zeros((HIDDEN,), jnp.float32)
        bo = jnp.zeros((HIDDEN,), jnp.float32)
        b1 = jnp.zeros((FFN,), jnp.float32)
        b2 = jnp.zeros((HIDDEN,), jnp.float32)
        g1 = jnp.ones((HIDDEN,), jnp.float32)
        be1 = jnp.zeros((HIDDEN,), jnp.float32)
        g2 = jnp.ones((HIDDEN,), jnp.float32)
        be2 = jnp.zeros((HIDDEN,), jnp.float32)

        # Fold 1/sqrt(HEAD_DIM) into the Q projection (weights AND bias);
        # column order is [q heads | k heads | v heads], each head HD contiguous cols.
        wqkv = jnp.concatenate([wq * inv_sqrt_hd, wk, wv], axis=1)   # (H, 3H)
        bqkv = jnp.concatenate([bq * inv_sqrt_hd, bk, bv], axis=0)   # (3H,)

        wqkv_l.append(wqkv.astype(jnp.bfloat16))
        wo_l.append(wo.astype(jnp.bfloat16))
        w1_l.append(w1.astype(jnp.bfloat16))
        w2_l.append(w2.astype(jnp.bfloat16))
        vec_l.append(jnp.stack([pad_row(bqkv), pad_row(bo), pad_row(b1), pad_row(b2),
                                pad_row(g1), pad_row(be1), pad_row(g2), pad_row(be2)]))

    params["layers"] = (jnp.stack(wqkv_l), jnp.stack(wo_l), jnp.stack(w1_l),
                        jnp.stack(w2_l), jnp.stack(vec_l))
    return params


def text_encoder_forward(params, input_ids, attention_mask):
    B, S = input_ids.shape
    # Embedding gathers stay in plain JAX glue; everything else runs in the kernel.
    # TODO(synk): at real sizes, gather word_emb rows inside the kernel via
    # scalar prefetch + pl.Element row-gather instead of materializing x_emb in HBM.
    pos = jnp.arange(S)
    x_emb = params["word_emb"][input_ids] + params["pos_emb"][pos][None, :, :]
    mask_bias = (1.0 - attention_mask.astype(jnp.float32)) * -1e9    # (B, S)
    cls = run_encoder(x_emb, mask_bias, params)                      # (B, H)
    # last_hidden_state[:, target_token_idx, :] with target_token_idx = 0
    return cls


if __name__ == "__main__":
    key = jax.random.PRNGKey(0)
    pkey, ikey = jax.random.split(key)
    params = init_params(pkey)

    B, S = 2, 8
    input_ids = jax.random.randint(ikey, (B, S), 0, VOCAB, dtype=jnp.int32)
    attention_mask = jnp.array([[1] * S,
                                [1] * (S - 2) + [0, 0]], dtype=jnp.int32)

    out = text_encoder_forward(params, input_ids, attention_mask)
    out = jax.block_until_ready(out)
    assert out.shape == (B, HIDDEN) and out.dtype == jnp.float32
    print("KERNEL_OK")
</pallas_src>

<mosaic_0001>
module attributes {stable_mosaic.version = 11 : i64} {
  func.func @encoder_kernel(%arg0: i32, %arg1: i32, %arg2: memref<1x16x32xf32, #tpu.memory_space<vmem>>, %arg3: memref<1x2x8xf32, #tpu.memory_space<vmem>>, %arg4: memref<2x32xf32, #tpu.memory_space<vmem>>, %arg5: memref<1x32x96xbf16, #tpu.memory_space<vmem>>, %arg6: memref<1x32x32xbf16, #tpu.memory_space<vmem>>, %arg7: memref<1x32x64xbf16, #tpu.memory_space<vmem>>, %arg8: memref<1x64x32xbf16, #tpu.memory_space<vmem>>, %arg9: memref<1x8x96xf32, #tpu.memory_space<vmem>>, %arg10: memref<1x2x32xf32, #tpu.memory_space<vmem>>, %arg11: memref<16x32xf32, #tpu.memory_space<vmem>>) attributes {dimension_semantics = [#tpu.dimension_semantics<parallel>, #tpu.dimension_semantics<arbitrary>], iteration_bounds = array<i64: 1, 2>, scalar_prefetch = 0 : i64, scratch_operands = 1 : i64, tpu.core_type = #tpu.core_type<tc>, window_params = [{transform_indices = @transform_0, window_bounds = array<i64: 1, 16, 32>}, {transform_indices = @transform_1, window_bounds = array<i64: 1, 2, 8>}, {pipeline_mode = #tpu.pipeline_mode<synchronous>, transform_indices = @transform_2, window_bounds = array<i64: 2, 32>}, {transform_indices = @transform_3, window_bounds = array<i64: 1, 32, 96>}, {transform_indices = @transform_4, window_bounds = array<i64: 1, 32, 32>}, {transform_indices = @transform_5, window_bounds = array<i64: 1, 32, 64>}, {transform_indices = @transform_6, window_bounds = array<i64: 1, 64, 32>}, {transform_indices = @transform_7, window_bounds = array<i64: 1, 8, 96>}, {transform_indices = @transform_8, window_bounds = array<i64: 1, 2, 32>}]} {
    %c0_i32 = arith.constant 0 : i32
    %0 = arith.cmpi eq, %arg1, %c0_i32 : i32
    %1 = arith.extui %0 : i1 to i32
    %c0_i32_0 = arith.constant 0 : i32
    %2 = arith.cmpi ne, %1, %c0_i32_0 : i32
    scf.if %2 {
      %c0_86 = arith.constant 0 : index
      %c0_87 = arith.constant 0 : index
      %c0_88 = arith.constant 0 : index
      %282 = vector.load %arg2[%c0_86, %c0_87, %c0_88] : memref<1x16x32xf32, #tpu.memory_space<vmem>>, vector<1x16x32xf32>
      %283 = vector.shape_cast %282 : vector<1x16x32xf32> to vector<16x32xf32>
      %c0_89 = arith.constant 0 : index
      %c0_90 = arith.constant 0 : index
      %284 = vector.load %arg4[%c0_89, %c0_90] : memref<2x32xf32, #tpu.memory_space<vmem>>, vector<1x32xf32>
      %c1_91 = arith.constant 1 : index
      %c0_92 = arith.constant 0 : index
      %285 = vector.load %arg4[%c1_91, %c0_92] : memref<2x32xf32, #tpu.memory_space<vmem>>, vector<1x32xf32>
      %cst_93 = arith.constant dense<0.000000e+00> : vector<16xf32>
      %286 = vector.multi_reduction <add>, %283, %cst_93 [1] : vector<16x32xf32> to vector<16xf32>
      %287 = vector.shape_cast %286 : vector<16xf32> to vector<16x1xf32>
      %cst_94 = arith.constant 3.200000e+01 : f32
      %288 = vector.broadcast %cst_94 : f32 to vector<16x1xf32>
      %289 = arith.divf %287, %288 : vector<16x1xf32>
      %290 = vector.broadcast %289 : vector<16x1xf32> to vector<16x32xf32>
      %291 = arith.subf %283, %290 : vector<16x32xf32>
      %292 = arith.mulf %291, %291 : vector<16x32xf32>
      %cst_95 = arith.constant dense<0.000000e+00> : vector<16xf32>
      %293 = vector.multi_reduction <add>, %292, %cst_95 [1] : vector<16x32xf32> to vector<16xf32>
      %294 = vector.shape_cast %293 : vector<16xf32> to vector<16x1xf32>
      %cst_96 = arith.constant 3.200000e+01 : f32
      %295 = vector.broadcast %cst_96 : f32 to vector<16x1xf32>
      %296 = arith.divf %294, %295 : vector<16x1xf32>
      %297 = vector.broadcast %289 : vector<16x1xf32> to vector<16x32xf32>
      %298 = arith.subf %283, %297 : vector<16x32xf32>
      %cst_97 = arith.constant 9.99999996E-13 : f32
      %299 = vector.broadcast %cst_97 : f32 to vector<16x1xf32>
      %300 = arith.addf %296, %299 : vector<16x1xf32>
      %301 = math.rsqrt %300 : vector<16x1xf32>
      %302 = vector.broadcast %301 : vector<16x1xf32> to vector<16x32xf32>
      %303 = arith.mulf %298, %302 : vector<16x32xf32>
      %304 = vector.broadcast %284 : vector<1x32xf32> to vector<16x32xf32>
      %305 = arith.mulf %303, %304 : vector<16x32xf32>
      %306 = vector.broadcast %285 : vector<1x32xf32> to vector<16x32xf32>
      %307 = arith.addf %305, %306 : vector<16x32xf32>
      %c0_98 = arith.constant 0 : index
      %c0_99 = arith.constant 0 : index
      %308 = vector.load %arg11[%c0_98, %c0_99] : memref<16x32xf32, #tpu.memory_space<vmem>>, vector<16x32xf32>
      tpu.vector_store %arg11[%c0_98, %c0_99], %307 {strides = array<i32>} : memref<16x32xf32, #tpu.memory_space<vmem>>, vector<16x32xf32>,
    } else {
    }
    %c0 = arith.constant 0 : index
    %c0_1 = arith.constant 0 : index
    %3 = vector.load %arg11[%c0, %c0_1] : memref<16x32xf32, #tpu.memory_space<vmem>>, vector<16x32xf32>
    %4 = arith.truncf %3 : vector<16x32xf32> to vector<16x32xbf16>
    %c0_2 = arith.constant 0 : index
    %c0_3 = arith.constant 0 : index
    %c0_4 = arith.constant 0 : index
    %5 = vector.load %arg9[%c0_2, %c0_3, %c0_4] : memref<1x8x96xf32, #tpu.memory_space<vmem>>, vector<1x1x96xf32>
    %6 = vector.shape_cast %5 : vector<1x1x96xf32> to vector<1x96xf32>
    %c0_5 = arith.constant 0 : index
    %c1 = arith.constant 1 : index
    %c0_6 = arith.constant 0 : index
    %7 = vector.load %arg9[%c0_5, %c1, %c0_6] : memref<1x8x96xf32, #tpu.memory_space<vmem>>, vector<1x1x32xf32>
    %8 = vector.shape_cast %7 : vector<1x1x32xf32> to vector<1x32xf32>
    %c0_7 = arith.constant 0 : index
    %c2 = arith.constant 2 : index
    %c0_8 = arith.constant 0 : index
    %9 = vector.load %arg9[%c0_7, %c2, %c0_8] : memref<1x8x96xf32, #tpu.memory_space<vmem>>, vector<1x1x64xf32>
    %10 = vector.shape_cast %9 : vector<1x1x64xf32> to vector<1x64xf32>
    %c0_9 = arith.constant 0 : index
    %c3 = arith.constant 3 : index
    %c0_10 = arith.constant 0 : index
    %11 = vector.load %arg9[%c0_9, %c3, %c0_10] : memref<1x8x96xf32, #tpu.memory_space<vmem>>, vector<1x1x32xf32>
    %12 = vector.shape_cast %11 : vector<1x1x32xf32> to vector<1x32xf32>
    %c0_11 = arith.constant 0 : index
    %c4 = arith.constant 4 : index
    %c0_12 = arith.constant 0 : index
    %13 = vector.load %arg9[%c0_11, %c4, %c0_12] : memref<1x8x96xf32, #tpu.memory_space<vmem>>, vector<1x1x32xf32>
    %14 = vector.shape_cast %13 : vector<1x1x32xf32> to vector<1x32xf32>
    %c0_13 = arith.constant 0 : index
    %c5 = arith.constant 5 : index
    %c0_14 = arith.constant 0 : index
    %15 = vector.load %arg9[%c0_13, %c5, %c0_14] : memref<1x8x96xf32, #tpu.memory_space<vmem>>, vector<1x1x32xf32>
    %16 = vector.shape_cast %15 : vector<1x1x32xf32> to vector<1x32xf32>
    %c0_15 = arith.constant 0 : index
    %c6 = arith.constant 6 : index
    %c0_16 = arith.constant 0 : index
    %17 = vector.load %arg9[%c0_15, %c6, %c0_16] : memref<1x8x96xf32, #tpu.memory_space<vmem>>, vector<1x1x32xf32>
    %18 = vector.shape_cast %17 : vector<1x1x32xf32> to vector<1x32xf32>
    %c0_17 = arith.constant 0 : index
    %c7 = arith.constant 7 : index
    %c0_18 = arith.constant 0 : index
    %19 = vector.load %arg9[%c0_17, %c7, %c0_18] : memref<1x8x96xf32, #tpu.memory_space<vmem>>, vector<1x1x32xf32>
    %20 = vector.shape_cast %19 : vector<1x1x32xf32> to vector<1x32xf32>
    %c0_19 = arith.constant 0 : index
    %c0_20 = arith.constant 0 : index
    %c0_21 = arith.constant 0 : index
    %21 = vector.load %arg5[%c0_19, %c0_20, %c0_21] : memref<1x32x96xbf16, #tpu.memory_space<vmem>>, vector<1x32x96xbf16>
    %22 = vector.shape_cast %21 : vector<1x32x96xbf16> to vector<32x96xbf16>
    %cst = arith.constant dense<0.000000e+00> : vector<16x96xf32>
    %23 = tpu.matmul %4, %22, %cst {dimension_numbers = #tpu.dot_dimension_numbers<[1], [0], [0], [1], [0, 0, 1, 1], [], []>} : vector<16x32xbf16>, vector<32x96xbf16>, vector<16x96xf32> -> vector<16x96xf32>
    %24 = vector.broadcast %6 : vector<1x96xf32> to vector<16x96xf32>
    %25 = arith.addf %23, %24 : vector<16x96xf32>
    %c0_22 = arith.constant 0 : index
    %c0_23 = arith.constant 0 : index
    %c0_24 = arith.constant 0 : index
    %26 = vector.load %arg3[%c0_22, %c0_23, %c0_24] : memref<1x2x8xf32, #tpu.memory_space<vmem>>, vector<1x2x8xf32>
    %27 = vector.shape_cast %26 : vector<1x2x8xf32> to vector<2x8xf32>
    %28 = vector.extract_strided_slice %27 {offsets = [0, 0], sizes = [1, 8], strides = [1, 1]} : vector<2x8xf32> to vector<1x8xf32>
    %29 = vector.extract_strided_slice %25 {offsets = [0, 0], sizes = [8, 8], strides = [1, 1]} : vector<16x96xf32> to vector<8x8xf32>
    %30 = arith.truncf %29 : vector<8x8xf32> to vector<8x8xbf16>
    %31 = vector.extract_strided_slice %25 {offsets = [0, 32], sizes = [8, 8], strides = [1, 1]} : vector<16x96xf32> to vector<8x8xf32>
    %32 = arith.truncf %31 : vector<8x8xf32> to vector<8x8xbf16>
    %33 = vector.extract_strided_slice %25 {offsets = [0, 64], sizes = [8, 8], strides = [1, 1]} : vector<16x96xf32> to vector<8x8xf32>
    %34 = arith.truncf %33 : vector<8x8xf32> to vector<8x8xbf16>
    %cst_25 = arith.constant dense<0.000000e+00> : vector<8x8xf32>
    %35 = tpu.matmul %30, %32, %cst_25 {dimension_numbers = #tpu.dot_dimension_numbers<[1], [1], [0], [0], [0, 0, 1, 0], [], []>} : vector<8x8xbf16>, vector<8x8xbf16>, vector<8x8xf32> -> vector<8x8xf32>
    %36 = vector.broadcast %28 : vector<1x8xf32> to vector<8x8xf32>
    %37 = arith.addf %35, %36 : vector<8x8xf32>
    %cst_26 = arith.constant dense<0xFF800000> : vector<8xf32>
    %38 = vector.multi_reduction <maximumf>, %37, %cst_26 [1] : vector<8x8xf32> to vector<8xf32>
    %39 = vector.shape_cast %38 : vector<8xf32> to vector<8x1xf32>
    %40 = vector.broadcast %39 : vector<8x1xf32> to vector<8x8xf32>
    %41 = arith.subf %37, %40 : vector<8x8xf32>
    %42 = math.exp %41 : vector<8x8xf32>
    %cst_27 = arith.constant dense<0.000000e+00> : vector<8xf32>
    %43 = vector.multi_reduction <add>, %42, %cst_27 [1] : vector<8x8xf32> to vector<8xf32>
    %44 = vector.shape_cast %43 : vector<8xf32> to vector<8x1xf32>
    %45 = tpu.reciprocal %44 {approx = true} : vector<8x1xf32> -> vector<8x1xf32>
    %46 = vector.broadcast %45 : vector<8x1xf32> to vector<8x8xf32>
    %47 = arith.mulf %42, %46 : vector<8x8xf32>
    %48 = arith.truncf %47 : vector<8x8xf32> to vector<8x8xbf16>
    %cst_28 = arith.constant dense<0.000000e+00> : vector<8x8xf32>
    %49 = tpu.matmul %48, %34, %cst_28 {dimension_numbers = #tpu.dot_dimension_numbers<[1], [0], [0], [1], [0, 0, 1, 1], [], []>} : vector<8x8xbf16>, vector<8x8xbf16>, vector<8x8xf32> -> vector<8x8xf32>
    %50 = vector.extract_strided_slice %25 {offsets = [0, 8], sizes = [8, 8], strides = [1, 1]} : vector<16x96xf32> to vector<8x8xf32>
    %51 = arith.truncf %50 : vector<8x8xf32> to vector<8x8xbf16>
    %52 = vector.extract_strided_slice %25 {offsets = [0, 40], sizes = [8, 8], strides = [1, 1]} : vector<16x96xf32> to vector<8x8xf32>
    %53 = arith.truncf %52 : vector<8x8xf32> to vector<8x8xbf16>
    %54 = vector.extract_strided_slice %25 {offsets = [0, 72], sizes = [8, 8], strides = [1, 1]} : vector<16x96xf32> to vector<8x8xf32>
    %55 = arith.truncf %54 : vector<8x8xf32> to vector<8x8xbf16>
    %cst_29 = arith.constant dense<0.000000e+00> : vector<8x8xf32>
    %56 = tpu.matmul %51, %53, %cst_29 {dimension_numbers = #tpu.dot_dimension_numbers<[1], [1], [0], [0], [0, 0, 1, 0], [], []>} : vector<8x8xbf16>, vector<8x8xbf16>, vector<8x8xf32> -> vector<8x8xf32>
    %57 = vector.broadcast %28 : vector<1x8xf32> to vector<8x8xf32>
    %58 = arith.addf %56, %57 : vector<8x8xf32>
    %cst_30 = arith.constant dense<0xFF800000> : vector<8xf32>
    %59 = vector.multi_reduction <maximumf>, %58, %cst_30 [1] : vector<8x8xf32> to vector<8xf32>
    %60 = vector.shape_cast %59 : vector<8xf32> to vector<8x1xf32>
    %61 = vector.broadcast %60 : vector<8x1xf32> to vector<8x8xf32>
    %62 = arith.subf %58, %61 : vector<8x8xf32>
    %63 = math.exp %62 : vector<8x8xf32>
    %cst_31 = arith.constant dense<0.000000e+00> : vector<8xf32>
    %64 = vector.multi_reduction <add>, %63, %cst_31 [1] : vector<8x8xf32> to vector<8xf32>
    %65 = vector.shape_cast %64 : vector<8xf32> to vector<8x1xf32>
    %66 = tpu.reciprocal %65 {approx = true} : vector<8x1xf32> -> vector<8x1xf32>
    %67 = vector.broadcast %66 : vector<8x1xf32> to vector<8x8xf32>
    %68 = arith.mulf %63, %67 : vector<8x8xf32>
    %69 = arith.truncf %68 : vector<8x8xf32> to vector<8x8xbf16>
    %cst_32 = arith.constant dense<0.000000e+00> : vector<8x8xf32>
    %70 = tpu.matmul %69, %55, %cst_32 {dimension_numbers = #tpu.dot_dimension_numbers<[1], [0], [0], [1], [0, 0, 1, 1], [], []>} : vector<8x8xbf16>, vector<8x8xbf16>, vector<8x8xf32> -> vector<8x8xf32>
    %71 = vector.extract_strided_slice %25 {offsets = [0, 16], sizes = [8, 8], strides = [1, 1]} : vector<16x96xf32> to vector<8x8xf32>
    %72 = arith.truncf %71 : vector<8x8xf32> to vector<8x8xbf16>
    %73 = vector.extract_strided_slice %25 {offsets = [0, 48], sizes = [8, 8], strides = [1, 1]} : vector<16x96xf32> to vector<8x8xf32>
    %74 = arith.truncf %73 : vector<8x8xf32> to vector<8x8xbf16>
    %75 = vector.extract_strided_slice %25 {offsets = [0, 80], sizes = [8, 8], strides = [1, 1]} : vector<16x96xf32> to vector<8x8xf32>
    %76 = arith.truncf %75 : vector<8x8xf32> to vector<8x8xbf16>
    %cst_33 = arith.constant dense<0.000000e+00> : vector<8x8xf32>
    %77 = tpu.matmul %72, %74, %cst_33 {dimension_numbers = #tpu.dot_dimension_numbers<[1], [1], [0], [0], [0, 0, 1, 0], [], []>} : vector<8x8xbf16>, vector<8x8xbf16>, vector<8x8xf32> -> vector<8x8xf32>
    %78 = vector.broadcast %28 : vector<1x8xf32> to vector<8x8xf32>
    %79 = arith.addf %77, %78 : vector<8x8xf32>
    %cst_34 = arith.constant dense<0xFF800000> : vector<8xf32>
    %80 = vector.multi_reduction <maximumf>, %79, %cst_34 [1] : vector<8x8xf32> to vector<8xf32>
    %81 = vector.shape_cast %80 : vector<8xf32> to vector<8x1xf32>
    %82 = vector.broadcast %81 : vector<8x1xf32> to vector<8x8xf32>
    %83 = arith.subf %79, %82 : vector<8x8xf32>
    %84 = math.exp %83 : vector<8x8xf32>
    %cst_35 = arith.constant dense<0.000000e+00> : vector<8xf32>
    %85 = vector.multi_reduction <add>, %84, %cst_35 [1] : vector<8x8xf32> to vector<8xf32>
    %86 = vector.shape_cast %85 : vector<8xf32> to vector<8x1xf32>
    %87 = tpu.reciprocal %86 {approx = true} : vector<8x1xf32> -> vector<8x1xf32>
    %88 = vector.broadcast %87 : vector<8x1xf32> to vector<8x8xf32>
    %89 = arith.mulf %84, %88 : vector<8x8xf32>
    %90 = arith.truncf %89 : vector<8x8xf32> to vector<8x8xbf16>
    %cst_36 = arith.constant dense<0.000000e+00> : vector<8x8xf32>
    %91 = tpu.matmul %90, %76, %cst_36 {dimension_numbers = #tpu.dot_dimension_numbers<[1], [0], [0], [1], [0, 0, 1, 1], [], []>} : vector<8x8xbf16>, vector<8x8xbf16>, vector<8x8xf32> -> vector<8x8xf32>
    %92 = vector.extract_strided_slice %25 {offsets = [0, 24], sizes = [8, 8], strides = [1, 1]} : vector<16x96xf32> to vector<8x8xf32>
    %93 = arith.truncf %92 : vector<8x8xf32> to vector<8x8xbf16>
    %94 = vector.extract_strided_slice %25 {offsets = [0, 56], sizes = [8, 8], strides = [1, 1]} : vector<16x96xf32> to vector<8x8xf32>
    %95 = arith.truncf %94 : vector<8x8xf32> to vector<8x8xbf16>
    %96 = vector.extract_strided_slice %25 {offsets = [0, 88], sizes = [8, 8], strides = [1, 1]} : vector<16x96xf32> to vector<8x8xf32>
    %97 = arith.truncf %96 : vector<8x8xf32> to vector<8x8xbf16>
    %cst_37 = arith.constant dense<0.000000e+00> : vector<8x8xf32>
    %98 = tpu.matmul %93, %95, %cst_37 {dimension_numbers = #tpu.dot_dimension_numbers<[1], [1], [0], [0], [0, 0, 1, 0], [], []>} : vector<8x8xbf16>, vector<8x8xbf16>, vector<8x8xf32> -> vector<8x8xf32>
    %99 = vector.broadcast %28 : vector<1x8xf32> to vector<8x8xf32>
    %100 = arith.addf %98, %99 : vector<8x8xf32>
    %cst_38 = arith.constant dense<0xFF800000> : vector<8xf32>
    %101 = vector.multi_reduction <maximumf>, %100, %cst_38 [1] : vector<8x8xf32> to vector<8xf32>
    %102 = vector.shape_cast %101 : vector<8xf32> to vector<8x1xf32>
    %103 = vector.broadcast %102 : vector<8x1xf32> to vector<8x8xf32>
    %104 = arith.subf %100, %103 : vector<8x8xf32>
    %105 = math.exp %104 : vector<8x8xf32>
    %cst_39 = arith.constant dense<0.000000e+00> : vector<8xf32>
    %106 = vector.multi_reduction <add>, %105, %cst_39 [1] : vector<8x8xf32> to vector<8xf32>
    %107 = vector.shape_cast %106 : vector<8xf32> to vector<8x1xf32>
    %108 = tpu.reciprocal %107 {approx = true} : vector<8x1xf32> -> vector<8x1xf32>
    %109 = vector.broadcast %108 : vector<8x1xf32> to vector<8x8xf32>
    %110 = arith.mulf %105, %109 : vector<8x8xf32>
    %111 = arith.truncf %110 : vector<8x8xf32> to vector<8x8xbf16>
    %cst_40 = arith.constant dense<0.000000e+00> : vector<8x8xf32>
    %112 = tpu.matmul %111, %97, %cst_40 {dimension_numbers = #tpu.dot_dimension_numbers<[1], [0], [0], [1], [0, 0, 1, 1], [], []>} : vector<8x8xbf16>, vector<8x8xbf16>, vector<8x8xf32> -> vector<8x8xf32>
    %113 = tpu.concatenate %49, %70, %91, %112 in 1 : vector<8x8xf32>, vector<8x8xf32>, vector<8x8xf32>, vector<8x8xf32> -> vector<8x32xf32>
    %114 = vector.extract_strided_slice %27 {offsets = [1, 0], sizes = [1, 8], strides = [1, 1]} : vector<2x8xf32> to vector<1x8xf32>
    %115 = vector.extract_strided_slice %25 {offsets = [8, 0], sizes = [8, 8], strides = [1, 1]} : vector<16x96xf32> to vector<8x8xf32>
    %116 = arith.truncf %115 : vector<8x8xf32> to vector<8x8xbf16>
    %117 = vector.extract_strided_slice %25 {offsets = [8, 32], sizes = [8, 8], strides = [1, 1]} : vector<16x96xf32> to vector<8x8xf32>
    %118 = arith.truncf %117 : vector<8x8xf32> to vector<8x8xbf16>
    %119 = vector.extract_strided_slice %25 {offsets = [8, 64], sizes = [8, 8], strides = [1, 1]} : vector<16x96xf32> to vector<8x8xf32>
    %120 = arith.truncf %119 : vector<8x8xf32> to vector<8x8xbf16>
    %cst_41 = arith.constant dense<0.000000e+00> : vector<8x8xf32>
    %121 = tpu.matmul %116, %118, %cst_41 {dimension_numbers = #tpu.dot_dimension_numbers<[1], [1], [0], [0], [0, 0, 1, 0], [], []>} : vector<8x8xbf16>, vector<8x8xbf16>, vector<8x8xf32> -> vector<8x8xf32>
    %122 = vector.broadcast %114 : vector<1x8xf32> to vector<8x8xf32>
    %123 = arith.addf %121, %122 : vector<8x8xf32>
    %cst_42 = arith.constant dense<0xFF800000> : vector<8xf32>
    %124 = vector.multi_reduction <maximumf>, %123, %cst_42 [1] : vector<8x8xf32> to vector<8xf32>
    %125 = vector.shape_cast %124 : vector<8xf32> to vector<8x1xf32>
    %126 = vector.broadcast %125 : vector<8x1xf32> to vector<8x8xf32>
    %127 = arith.subf %123, %126 : vector<8x8xf32>
    %128 = math.exp %127 : vector<8x8xf32>
    %cst_43 = arith.constant dense<0.000000e+00> : vector<8xf32>
    %129 = vector.multi_reduction <add>, %128, %cst_43 [1] : vector<8x8xf32> to vector<8xf32>
    %130 = vector.shape_cast %129 : vector<8xf32> to vector<8x1xf32>
    %131 = tpu.reciprocal %130 {approx = true} : vector<8x1xf32> -> vector<8x1xf32>
    %132 = vector.broadcast %131 : vector<8x1xf32> to vector<8x8xf32>
    %133 = arith.mulf %128, %132 : vector<8x8xf32>
    %134 = arith.truncf %133 : vector<8x8xf32> to vector<8x8xbf16>
    %cst_44 = arith.constant dense<0.000000e+00> : vector<8x8xf32>
    %135 = tpu.matmul %134, %120, %cst_44 {dimension_numbers = #tpu.dot_dimension_numbers<[1], [0], [0], [1], [0, 0, 1, 1], [], []>} : vector<8x8xbf16>, vector<8x8xbf16>, vector<8x8xf32> -> vector<8x8xf32>
    %136 = vector.extract_strided_slice %25 {offsets = [8, 8], sizes = [8, 8], strides = [1, 1]} : vector<16x96xf32> to vector<8x8xf32>
    %137 = arith.truncf %136 : vector<8x8xf32> to vector<8x8xbf16>
    %138 = vector.extract_strided_slice %25 {offsets = [8, 40], sizes = [8, 8], strides = [1, 1]} : vector<16x96xf32> to vector<8x8xf32>
    %139 = arith.truncf %138 : vector<8x8xf32> to vector<8x8xbf16>
    %140 = vector.extract_strided_slice %25 {offsets = [8, 72], sizes = [8, 8], strides = [1, 1]} : vector<16x96xf32> to vector<8x8xf32>
    %141 = arith.truncf %140 : vector<8x8xf32> to vector<8x8xbf16>
    %cst_45 = arith.constant dense<0.000000e+00> : vector<8x8xf32>
    %142 = tpu.matmul %137, %139, %cst_45 {dimension_numbers = #tpu.dot_dimension_numbers<[1], [1], [0], [0], [0, 0, 1, 0], [], []>} : vector<8x8xbf16>, vector<8x8xbf16>, vector<8x8xf32> -> vector<8x8xf32>
    %143 = vector.broadcast %114 : vector<1x8xf32> to vector<8x8xf32>
    %144 = arith.addf %142, %143 : vector<8x8xf32>
    %cst_46 = arith.constant dense<0xFF800000> : vector<8xf32>
    %145 = vector.multi_reduction <maximumf>, %144, %cst_46 [1] : vector<8x8xf32> to vector<8xf32>
    %146 = vector.shape_cast %145 : vector<8xf32> to vector<8x1xf32>
    %147 = vector.broadcast %146 : vector<8x1xf32> to vector<8x8xf32>
    %148 = arith.subf %144, %147 : vector<8x8xf32>
    %149 = math.exp %148 : vector<8x8xf32>
    %cst_47 = arith.constant dense<0.000000e+00> : vector<8xf32>
    %150 = vector.multi_reduction <add>, %149, %cst_47 [1] : vector<8x8xf32> to vector<8xf32>
    %151 = vector.shape_cast %150 : vector<8xf32> to vector<8x1xf32>
    %152 = tpu.reciprocal %151 {approx = true} : vector<8x1xf32> -> vector<8x1xf32>
    %153 = vector.broadcast %152 : vector<8x1xf32> to vector<8x8xf32>
    %154 = arith.mulf %149, %153 : vector<8x8xf32>
    %155 = arith.truncf %154 : vector<8x8xf32> to vector<8x8xbf16>
    %cst_48 = arith.constant dense<0.000000e+00> : vector<8x8xf32>
    %156 = tpu.matmul %155, %141, %cst_48 {dimension_numbers = #tpu.dot_dimension_numbers<[1], [0], [0], [1], [0, 0, 1, 1], [], []>} : vector<8x8xbf16>, vector<8x8xbf16>, vector<8x8xf32> -> vector<8x8xf32>
    %157 = vector.extract_strided_slice %25 {offsets = [8, 16], sizes = [8, 8], strides = [1, 1]} : vector<16x96xf32> to vector<8x8xf32>
    %158 = arith.truncf %157 : vector<8x8xf32> to vector<8x8xbf16>
    %159 = vector.extract_strided_slice %25 {offsets = [8, 48], sizes = [8, 8], strides = [1, 1]} : vector<16x96xf32> to vector<8x8xf32>
    %160 = arith.truncf %159 : vector<8x8xf32> to vector<8x8xbf16>
    %161 = vector.extract_strided_slice %25 {offsets = [8, 80], sizes = [8, 8], strides = [1, 1]} : vector<16x96xf32> to vector<8x8xf32>
    %162 = arith.truncf %161 : vector<8x8xf32> to vector<8x8xbf16>
    %cst_49 = arith.constant dense<0.000000e+00> : vector<8x8xf32>
    %163 = tpu.matmul %158, %160, %cst_49 {dimension_numbers = #tpu.dot_dimension_numbers<[1], [1], [0], [0], [0, 0, 1, 0], [], []>} : vector<8x8xbf16>, vector<8x8xbf16>, vector<8x8xf32> -> vector<8x8xf32>
    %164 = vector.broadcast %114 : vector<1x8xf32> to vector<8x8xf32>
    %165 = arith.addf %163, %164 : vector<8x8xf32>
    %cst_50 = arith.constant dense<0xFF800000> : vector<8xf32>
    %166 = vector.multi_reduction <maximumf>, %165, %cst_50 [1] : vector<8x8xf32> to vector<8xf32>
    %167 = vector.shape_cast %166 : vector<8xf32> to vector<8x1xf32>
    %168 = vector.broadcast %167 : vector<8x1xf32> to vector<8x8xf32>
    %169 = arith.subf %165, %168 : vector<8x8xf32>
    %170 = math.exp %169 : vector<8x8xf32>
    %cst_51 = arith.constant dense<0.000000e+00> : vector<8xf32>
    %171 = vector.multi_reduction <add>, %170, %cst_51 [1] : vector<8x8xf32> to vector<8xf32>
    %172 = vector.shape_cast %171 : vector<8xf32> to vector<8x1xf32>
    %173 = tpu.reciprocal %172 {approx = true} : vector<8x1xf32> -> vector<8x1xf32>
    %174 = vector.broadcast %173 : vector<8x1xf32> to vector<8x8xf32>
    %175 = arith.mulf %170, %174 : vector<8x8xf32>
    %176 = arith.truncf %175 : vector<8x8xf32> to vector<8x8xbf16>
    %cst_52 = arith.constant dense<0.000000e+00> : vector<8x8xf32>
    %177 = tpu.matmul %176, %162, %cst_52 {dimension_numbers = #tpu.dot_dimension_numbers<[1], [0], [0], [1], [0, 0, 1, 1], [], []>} : vector<8x8xbf16>, vector<8x8xbf16>, vector<8x8xf32> -> vector<8x8xf32>
    %178 = vector.extract_strided_slice %25 {offsets = [8, 24], sizes = [8, 8], strides = [1, 1]} : vector<16x96xf32> to vector<8x8xf32>
    %179 = arith.truncf %178 : vector<8x8xf32> to vector<8x8xbf16>
    %180 = vector.extract_strided_slice %25 {offsets = [8, 56], sizes = [8, 8], strides = [1, 1]} : vector<16x96xf32> to vector<8x8xf32>
    %181 = arith.truncf %180 : vector<8x8xf32> to vector<8x8xbf16>
    %182 = vector.extract_strided_slice %25 {offsets = [8, 88], sizes = [8, 8], strides = [1, 1]} : vector<16x96xf32> to vector<8x8xf32>
    %183 = arith.truncf %182 : vector<8x8xf32> to vector<8x8xbf16>
    %cst_53 = arith.constant dense<0.000000e+00> : vector<8x8xf32>
    %184 = tpu.matmul %179, %181, %cst_53 {dimension_numbers = #tpu.dot_dimension_numbers<[1], [1], [0], [0], [0, 0, 1, 0], [], []>} : vector<8x8xbf16>, vector<8x8xbf16>, vector<8x8xf32> -> vector<8x8xf32>
    %185 = vector.broadcast %114 : vector<1x8xf32> to vector<8x8xf32>
    %186 = arith.addf %184, %185 : vector<8x8xf32>
    %cst_54 = arith.constant dense<0xFF800000> : vector<8xf32>
    %187 = vector.multi_reduction <maximumf>, %186, %cst_54 [1] : vector<8x8xf32> to vector<8xf32>
    %188 = vector.shape_cast %187 : vector<8xf32> to vector<8x1xf32>
    %189 = vector.broadcast %188 : vector<8x1xf32> to vector<8x8xf32>
    %190 = arith.subf %186, %189 : vector<8x8xf32>
    %191 = math.exp %190 : vector<8x8xf32>
    %cst_55 = arith.constant dense<0.000000e+00> : vector<8xf32>
    %192 = vector.multi_reduction <add>, %191, %cst_55 [1] : vector<8x8xf32> to vector<8xf32>
    %193 = vector.shape_cast %192 : vector<8xf32> to vector<8x1xf32>
    %194 = tpu.reciprocal %193 {approx = true} : vector<8x1xf32> -> vector<8x1xf32>
    %195 = vector.broadcast %194 : vector<8x1xf32> to vector<8x8xf32>
    %196 = arith.mulf %191, %195 : vector<8x8xf32>
    %197 = arith.truncf %196 : vector<8x8xf32> to vector<8x8xbf16>
    %cst_56 = arith.constant dense<0.000000e+00> : vector<8x8xf32>
    %198 = tpu.matmul %197, %183, %cst_56 {dimension_numbers = #tpu.dot_dimension_numbers<[1], [0], [0], [1], [0, 0, 1, 1], [], []>} : vector<8x8xbf16>, vector<8x8xbf16>, vector<8x8xf32> -> vector<8x8xf32>
    %199 = tpu.concatenate %135, %156, %177, %198 in 1 : vector<8x8xf32>, vector<8x8xf32>, vector<8x8xf32>, vector<8x8xf32> -> vector<8x32xf32>
    %200 = tpu.concatenate %113, %199 in 0 : vector<8x32xf32>, vector<8x32xf32> -> vector<16x32xf32>
    %201 = arith.truncf %200 : vector<16x32xf32> to vector<16x32xbf16>
    %c0_57 = arith.constant 0 : index
    %c0_58 = arith.constant 0 : index
    %c0_59 = arith.constant 0 : index
    %202 = vector.load %arg6[%c0_57, %c0_58, %c0_59] : memref<1x32x32xbf16, #tpu.memory_space<vmem>>, vector<1x32x32xbf16>
    %203 = vector.shape_cast %202 : vector<1x32x32xbf16> to vector<32x32xbf16>
    %cst_60 = arith.constant dense<0.000000e+00> : vector<16x32xf32>
    %204 = tpu.matmul %201, %203, %cst_60 {dimension_numbers = #tpu.dot_dimension_numbers<[1], [0], [0], [1], [0, 0, 1, 1], [], []>} : vector<16x32xbf16>, vector<32x32xbf16>, vector<16x32xf32> -> vector<16x32xf32>
    %205 = vector.broadcast %8 : vector<1x32xf32> to vector<16x32xf32>
    %206 = arith.addf %204, %205 : vector<16x32xf32>
    %207 = arith.addf %3, %206 : vector<16x32xf32>
    %cst_61 = arith.constant dense<0.000000e+00> : vector<16xf32>
    %208 = vector.multi_reduction <add>, %207, %cst_61 [1] : vector<16x32xf32> to vector<16xf32>
    %209 = vector.shape_cast %208 : vector<16xf32> to vector<16x1xf32>
    %cst_62 = arith.constant 3.200000e+01 : f32
    %210 = vector.broadcast %cst_62 : f32 to vector<16x1xf32>
    %211 = arith.divf %209, %210 : vector<16x1xf32>
    %212 = vector.broadcast %211 : vector<16x1xf32> to vector<16x32xf32>
    %213 = arith.subf %207, %212 : vector<16x32xf32>
    %214 = arith.mulf %213, %213 : vector<16x32xf32>
    %cst_63 = arith.constant dense<0.000000e+00> : vector<16xf32>
    %215 = vector.multi_reduction <add>, %214, %cst_63 [1] : vector<16x32xf32> to vector<16xf32>
    %216 = vector.shape_cast %215 : vector<16xf32> to vector<16x1xf32>
    %cst_64 = arith.constant 3.200000e+01 : f32
    %217 = vector.broadcast %cst_64 : f32 to vector<16x1xf32>
    %218 = arith.divf %216, %217 : vector<16x1xf32>
    %219 = vector.broadcast %211 : vector<16x1xf32> to vector<16x32xf32>
    %220 = arith.subf %207, %219 : vector<16x32xf32>
    %cst_65 = arith.constant 9.99999996E-13 : f32
    %221 = vector.broadcast %cst_65 : f32 to vector<16x1xf32>
    %222 = arith.addf %218, %221 : vector<16x1xf32>
    %223 = math.rsqrt %222 : vector<16x1xf32>
    %224 = vector.broadcast %223 : vector<16x1xf32> to vector<16x32xf32>
    %225 = arith.mulf %220, %224 : vector<16x32xf32>
    %226 = vector.broadcast %14 : vector<1x32xf32> to vector<16x32xf32>
    %227 = arith.mulf %225, %226 : vector<16x32xf32>
    %228 = vector.broadcast %16 : vector<1x32xf32> to vector<16x32xf32>
    %229 = arith.addf %227, %228 : vector<16x32xf32>
    %230 = arith.truncf %229 : vector<16x32xf32> to vector<16x32xbf16>
    %c0_66 = arith.constant 0 : index
    %c0_67 = arith.constant 0 : index
    %c0_68 = arith.constant 0 : index
    %231 = vector.load %arg7[%c0_66, %c0_67, %c0_68] : memref<1x32x64xbf16, #tpu.memory_space<vmem>>, vector<1x32x64xbf16>
    %232 = vector.shape_cast %231 : vector<1x32x64xbf16> to vector<32x64xbf16>
    %cst_69 = arith.constant dense<0.000000e+00> : vector<16x64xf32>
    %233 = tpu.matmul %230, %232, %cst_69 {dimension_numbers = #tpu.dot_dimension_numbers<[1], [0], [0], [1], [0, 0, 1, 1], [], []>} : vector<16x32xbf16>, vector<32x64xbf16>, vector<16x64xf32> -> vector<16x64xf32>
    %234 = vector.broadcast %10 : vector<1x64xf32> to vector<16x64xf32>
    %235 = arith.addf %233, %234 : vector<16x64xf32>
    %236 = arith.mulf %235, %235 : vector<16x64xf32>
    %237 = arith.mulf %235, %236 : vector<16x64xf32>
    %cst_70 = arith.constant 4.471500e-02 : f32
    %238 = vector.broadcast %cst_70 : f32 to vector<16x64xf32>
    %239 = arith.mulf %238, %237 : vector<16x64xf32>
    %240 = arith.addf %235, %239 : vector<16x64xf32>
    %cst_71 = arith.constant 0.797884583 : f32
    %241 = vector.broadcast %cst_71 : f32 to vector<16x64xf32>
    %242 = arith.mulf %241, %240 : vector<16x64xf32>
    %243 = math.tanh %242 : vector<16x64xf32>
    %cst_72 = arith.constant 1.000000e+00 : f32
    %244 = vector.broadcast %cst_72 : f32 to vector<16x64xf32>
    %245 = arith.addf %244, %243 : vector<16x64xf32>
    %cst_73 = arith.constant 5.000000e-01 : f32
    %246 = vector.broadcast %cst_73 : f32 to vector<16x64xf32>
    %247 = arith.mulf %246, %245 : vector<16x64xf32>
    %248 = arith.mulf %235, %247 : vector<16x64xf32>
    %249 = arith.truncf %248 : vector<16x64xf32> to vector<16x64xbf16>
    %c0_74 = arith.constant 0 : index
    %c0_75 = arith.constant 0 : index
    %c0_76 = arith.constant 0 : index
    %250 = vector.load %arg8[%c0_74, %c0_75, %c0_76] : memref<1x64x32xbf16, #tpu.memory_space<vmem>>, vector<1x64x32xbf16>
    %251 = vector.shape_cast %250 : vector<1x64x32xbf16> to vector<64x32xbf16>
    %cst_77 = arith.constant dense<0.000000e+00> : vector<16x32xf32>
    %252 = tpu.matmul %249, %251, %cst_77 {dimension_numbers = #tpu.dot_dimension_numbers<[1], [0], [0], [1], [0, 0, 1, 1], [], []>} : vector<16x64xbf16>, vector<64x32xbf16>, vector<16x32xf32> -> vector<16x32xf32>
    %253 = vector.broadcast %12 : vector<1x32xf32> to vector<16x32xf32>
    %254 = arith.addf %252, %253 : vector<16x32xf32>
    %255 = arith.addf %229, %254 : vector<16x32xf32>
    %cst_78 = arith.constant dense<0.000000e+00> : vector<16xf32>
    %256 = vector.multi_reduction <add>, %255, %cst_78 [1] : vector<16x32xf32> to vector<16xf32>
    %257 = vector.shape_cast %256 : vector<16xf32> to vector<16x1xf32>
    %cst_79 = arith.constant 3.200000e+01 : f32
    %258 = vector.broadcast %cst_79 : f32 to vector<16x1xf32>
    %259 = arith.divf %257, %258 : vector<16x1xf32>
    %260 = vector.broadcast %259 : vector<16x1xf32> to vector<16x32xf32>
    %261 = arith.subf %255, %260 : vector<16x32xf32>
    %262 = arith.mulf %261, %261 : vector<16x32xf32>
    %cst_80 = arith.constant dense<0.000000e+00> : vector<16xf32>
    %263 = vector.multi_reduction <add>, %262, %cst_80 [1] : vector<16x32xf32> to vector<16xf32>
    %264 = vector.shape_cast %263 : vector<16xf32> to vector<16x1xf32>
    %cst_81 = arith.constant 3.200000e+01 : f32
    %265 = vector.broadcast %cst_81 : f32 to vector<16x1xf32>
    %266 = arith.divf %264, %265 : vector<16x1xf32>
    %267 = vector.broadcast %259 : vector<16x1xf32> to vector<16x32xf32>
    %268 = arith.subf %255, %267 : vector<16x32xf32>
    %cst_82 = arith.constant 9.99999996E-13 : f32
    %269 = vector.broadcast %cst_82 : f32 to vector<16x1xf32>
    %270 = arith.addf %266, %269 : vector<16x1xf32>
    %271 = math.rsqrt %270 : vector<16x1xf32>
    %272 = vector.broadcast %271 : vector<16x1xf32> to vector<16x32xf32>
    %273 = arith.mulf %268, %272 : vector<16x32xf32>
    %274 = vector.broadcast %18 : vector<1x32xf32> to vector<16x32xf32>
    %275 = arith.mulf %273, %274 : vector<16x32xf32>
    %276 = vector.broadcast %20 : vector<1x32xf32> to vector<16x32xf32>
    %277 = arith.addf %275, %276 : vector<16x32xf32>
    %c0_83 = arith.constant 0 : index
    %c0_84 = arith.constant 0 : index
    %278 = vector.load %arg11[%c0_83, %c0_84] : memref<16x32xf32, #tpu.memory_space<vmem>>, vector<16x32xf32>
    tpu.vector_store %arg11[%c0_83, %c0_84], %277 {strides = array<i32>} : memref<16x32xf32, #tpu.memory_space<vmem>>, vector<16x32xf32>,
    %c1_i32 = arith.constant 1 : i32
    %279 = arith.cmpi eq, %arg1, %c1_i32 : i32
    %280 = arith.extui %279 : i1 to i32
    %c0_i32_85 = arith.constant 0 : i32
    %281 = arith.cmpi ne, %280, %c0_i32_85 : i32
    scf.if %281 {
      %282 = vector.extract_strided_slice %277 {offsets = [0, 0], sizes = [1, 32], strides = [1, 1]} : vector<16x32xf32> to vector<1x32xf32>
      %283 = vector.extract_strided_slice %277 {offsets = [8, 0], sizes = [1, 32], strides = [1, 1]} : vector<16x32xf32> to vector<1x32xf32>
      %284 = tpu.concatenate %282, %283 in 0 : vector<1x32xf32>, vector<1x32xf32> -> vector<2x32xf32>
      %c0_86 = arith.constant 0 : index
      %c0_87 = arith.constant 0 : index
      %c0_88 = arith.constant 0 : index
      %285 = vector.load %arg10[%c0_86, %c0_87, %c0_88] : memref<1x2x32xf32, #tpu.memory_space<vmem>>, vector<1x2x32xf32>
      %286 = vector.shape_cast %285 : vector<1x2x32xf32> to vector<2x32xf32>
      %287 = vector.shape_cast %284 : vector<2x32xf32> to vector<1x2x32xf32>
      tpu.vector_store %arg10[%c0_86, %c0_87, %c0_88], %287 {strides = array<i32>} : memref<1x2x32xf32, #tpu.memory_space<vmem>>, vector<1x2x32xf32>,
    } else {
    }
    return
  }
  func.func @transform_0(%arg0: i32, %arg1: i32) -> (i32, i32, i32) {
    %c0_i32 = arith.constant 0 : i32
    %c0_i32_0 = arith.constant 0 : i32
    %c0_i32_1 = arith.constant 0 : i32
    return %arg0, %c0_i32, %c0_i32_0 : i32, i32, i32
  }
  func.func @transform_1(%arg0: i32, %arg1: i32) -> (i32, i32, i32) {
    %c0_i32 = arith.constant 0 : i32
    %c0_i32_0 = arith.constant 0 : i32
    %c0_i32_1 = arith.constant 0 : i32
    return %arg0, %c0_i32, %c0_i32_0 : i32, i32, i32
  }
  func.func @transform_2(%arg0: i32, %arg1: i32) -> (i32, i32) {
    %c0_i32 = arith.constant 0 : i32
    %c0_i32_0 = arith.constant 0 : i32
    %c0_i32_1 = arith.constant 0 : i32
    return %c0_i32, %c0_i32_0 : i32, i32
  }
  func.func @transform_3(%arg0: i32, %arg1: i32) -> (i32, i32, i32) {
    %c0_i32 = arith.constant 0 : i32
    %c0_i32_0 = arith.constant 0 : i32
    %c0_i32_1 = arith.constant 0 : i32
    return %arg1, %c0_i32, %c0_i32_0 : i32, i32, i32
  }
  func.func @transform_4(%arg0: i32, %arg1: i32) -> (i32, i32, i32) {
    %c0_i32 = arith.constant 0 : i32
    %c0_i32_0 = arith.constant 0 : i32
    %c0_i32_1 = arith.constant 0 : i32
    return %arg1, %c0_i32, %c0_i32_0 : i32, i32, i32
  }
  func.func @transform_5(%arg0: i32, %arg1: i32) -> (i32, i32, i32) {
    %c0_i32 = arith.constant 0 : i32
    %c0_i32_0 = arith.constant 0 : i32
    %c0_i32_1 = arith.constant 0 : i32
    return %arg1, %c0_i32, %c0_i32_0 : i32, i32, i32
  }
  func.func @transform_6(%arg0: i32, %arg1: i32) -> (i32, i32, i32) {
    %c0_i32 = arith.constant 0 : i32
    %c0_i32_0 = arith.constant 0 : i32
    %c0_i32_1 = arith.constant 0 : i32
    return %arg1, %c0_i32, %c0_i32_0 : i32, i32, i32
  }
  func.func @transform_7(%arg0: i32, %arg1: i32) -> (i32, i32, i32) {
    %c0_i32 = arith.constant 0 : i32
    %c0_i32_0 = arith.constant 0 : i32
    %c0_i32_1 = arith.constant 0 : i32
    return %arg1, %c0_i32, %c0_i32_0 : i32, i32, i32
  }
  func.func @transform_8(%arg0: i32, %arg1: i32) -> (i32, i32, i32) {
    %c0_i32 = arith.constant 0 : i32
    %c0_i32_0 = arith.constant 0 : i32
    %c0_i32_1 = arith.constant 0 : i32
    return %arg0, %c0_i32, %c0_i32_0 : i32, i32, i32
  }
}

</mosaic_0001>

<bundles_post_ra>
// kernel: tpu_custom_call.1
= control target key start
LH: loop header
LB: loop body
LE: loop exit
PB: predicated region body
PF: predicated region fallthrough
CT: control target
= control target key end

     0   :  { %13 = vsyncpa [#allocation4], 0  ;;  %s2944_s0 = inlined_call_operand.hbm [shape: f32[1,16,32], index: 0, kind: input, shape index: {}]   ;;  %s2945_s1 = inlined_call_operand.vmem [shape: f32[1,2,8], index: 1, kind: input, shape index: {}]   ;;  %s2946_s2 = inlined_call_operand.hbm [shape: f32[2,32], index: 2, kind: input, shape index: {}]   ;;  %s2947_s3 = inlined_call_operand.vmem [shape: bf16[2,32,96], index: 3, kind: input, shape index: {}]   ;;  %s2948_s4 = inlined_call_operand.vmem [shape: bf16[2,32,32], index: 4, kind: input, shape index: {}]   ;;  %s2949_s5 = inlined_call_operand.vmem [shape: bf16[2,32,64], index: 5, kind: input, shape index: {}]   ;;  %s2950_s6 = inlined_call_operand.vmem [shape: bf16[2,64,32], index: 6, kind: input, shape index: {}]   ;;  %s2951_s7 = inlined_call_operand.vmem [shape: f32[2,8,96], index: 7, kind: input, shape index: {}]   ;;  %s2952_s8 = inlined_call_operand.hbm [shape: f32[1,2,32], index: 8, kind: output, shape index: {}]  }
   0x1   :  { %14 = vsyncpa [#allocation7], 0 }
   0x2   :  { %15 = vsyncpa [#allocation5], 0  ;;  %s2532_s27 = smov 0   ;;  %s2534_s28 = smov 0  }
   0x3   :  { %s2536_s29 = smov 0  }
   0x4 LB: > { %s1959_s30 = sadd.s32 4294967295, %s2464_s29   ;;  %s30_s9 = sadd.s32 1, %s2460_s28  ;;  %s2464_s29 = sphi %s2536_s29, %s21_s29   ;;  %s2460_s28 = sphi %s2534_s28, %s2963_s28   ;;  %s2456_s27 = sphi %s2532_s27, %s2962_s27  }
   0x5   : > { %p31_p0 = scmp.ge.s32.totalorder %s30_s9, 2  ;;  %p1960_p1 = scmp.ge.s32.totalorder %s2464_s29, 1 }
   0x6   : > { %p267_p2 = scmp.lt.s32.totalorder %s2464_s29, 3  ;;  %p2559_p4 = scmp.eq.s32.totalorder %s1959_s30, 0 }
   0x7   : > { %s2965_s9 = smov (%p31_p0, %s30_s9), 0  ;;  %s2466_s12 = smov [#allocation3]  }
   0x8   : > { %p2553_p3 = pnand %p1960_p1, %p267_p2  ;;  %s282_s13 = sshll.u32 %s2466_s12, 4  ;;  %s283_s13 = int_to_ptr.vmem [resolvable:$true] %s282_s13 }
   0x9   : > { %s2957_s11 = scalar_select %p2559_p4, 1, 0 }
   0xa   : > { %s2956_s10 = scalar_select %p2553_p3, 1, 0 }
   0xb   : > { %p2217_p5 = pneg %p2553_p3  ;;  %s2467_s15 = smov [#allocation6]  }
   0xc   : > { %s303_s16 = sshll.u32 %s2467_s15, 4  ;;  %s2348_s19 = scalar_lea.hbm %s2944_s0, 256  ;;  %s2571_s16 = int_to_ptr.vmem [resolvable:$true] %s303_s16 }
   0xd   : > { %p2567_p6 = pnand %p2559_p4, %p2217_p5  ;;  %p2349_p7 = scmp.ne.s32.totalorder %s2944_s0, %s2348_s19 }
   0xe   : > { %p2355_p11 = scmp.lt.u32.totalorder %s2348_s19, %s2944_s0 }
   0xf   : > { %p2350_p8 = pneg %p2567_p6 }
  0x11   : > { %p2351_p9 = pnand %p2350_p8, %p2349_p7 }
  0x13   : > { %p2352_p10 = pneg %p2351_p9 }
  0x15   : > { %p2357_p12 = pnand %p2355_p11, %p2352_p10 }
  0x17   : > { %2360 = shalt.err (!%p2357_p12)
}
  0x18   : > { %s2361_s24 = scalar_lea.vmem %s283_s13, 256  ;;  %p2369_p2 = scmp.lt.s32.totalorder %s283_s13, %s283_s13 }
  0x19   : > { %p2362_p13 = scmp.ne.s32.totalorder %s283_s13, %s2361_s24  ;;  %p2370_p5 = scmp.lt.s32.totalorder %s2361_s24, %s2361_s24 }
  0x1b   : > { %p2364_p0 = pnand %p2362_p13, %p2350_p8  ;;  %p2371_p4 = por %p2370_p5, %p2369_p2 }
  0x1d   : > { %p2365_p1 = pneg %p2364_p0 }
  0x1f   : > { %p2372_p3 = pnand %p2371_p4, %p2365_p1 }
  0x21   : > { %2375 = shalt.err (!%p2372_p3)
}
  0x22   : > { %s2468_s25 = smov 128   ;;  %s2469_s26 = smov 8  }
  0x23   : > { %2220 = dma.hbm_to_vmem [thread:$0]  (!%p2567_p6), %s2944_s0, 256, %s283_s13, [#allocation4], %s2468_s25, %s2468_s25, %s2469_s26  }
  0x24   : > { %s2376_s19 = scalar_lea.hbm %s2946_s2, 32 }
  0x25   : > { %p2377_p7 = scmp.ne.s32.totalorder %s2946_s2, %s2376_s19  ;;  %p2383_p9 = scmp.lt.u32.totalorder %s2376_s19, %s2946_s2 }
  0x27   : > { %p2379_p3 = pnand %p2377_p7, %p2350_p8 }
  0x29   : > { %p2380_p4 = pneg %p2379_p3 }
  0x2b   : > { %p2385_p10 = pnand %p2383_p9, %p2380_p4 }
  0x2d   : > { %2388 = shalt.err (!%p2385_p10)
}
  0x2e   : > { %s2389_s13 = scalar_lea.vmem %s2571_s16, 32  ;;  %p2397_p0 = scmp.lt.s32.totalorder %s2571_s16, %s2571_s16 }
  0x2f   : > { %p2390_p11 = scmp.ne.s32.totalorder %s2571_s16, %s2389_s13  ;;  %p2398_p1 = scmp.lt.s32.totalorder %s2389_s13, %s2389_s13 }
  0x31   : > { %p2392_p12 = pnand %p2390_p11, %p2350_p8  ;;  %p2399_p2 = por %p2398_p1, %p2397_p0 }
  0x33   : > { %p2393_p13 = pneg %p2392_p12 }
  0x35   : > { %p2400_p5 = pnand %p2399_p2, %p2393_p13 }
  0x37   : > { %2403 = shalt.err (!%p2400_p5)
}
  0x38   : > { %2223 = dma.hbm_to_vmem [thread:$0]  (!%p2567_p6), %s2946_s2, 32, %s2571_s16, [#allocation7]  }
  0x39   : > { %p2959_p7 = scmp.ne.s32.totalorder %s2956_s10, 0 }
  0x3a   : > { %p2960_p3 = scmp.ne.s32.totalorder (!%p2959_p7), %s2957_s11, 0 }
  0x3b   : > { %355 = sbr.rel (%p2959_p7) target bundleno = 3050 (0xbea), region = 52 }
  0x42   : > { %2443 = dma.done.wait (%p2960_p3), [#allocation4], 256  }
  0x43   : > { %2445 = vsyncadd (%p2960_p3), [#allocation4], 4294967040 }
  0x44   : > { %2447 = dma.done.wait (%p2960_p3), [#allocation7], 32  }
  0x45   : > { %2449 = vsyncadd (%p2960_p3), [#allocation7], 4294967264  ;;  %p415_p8 = scmp.lt.s32.totalorder %s2456_s27, 1  ;;  %p1977_p6 = scmp.ne.s32.totalorder %s2456_s27, 0 }
  0x46   : > { %v444_v0 = vld [vmem:[#allocation3] sm:$0xff] (!%p1977_p6)  ;;  %vm448_vm0 = vcmask (!%p1977_p6), 261120   ;;  %v445_v1 = vld [vmem:[#allocation3 + $0x8] sm:$0xff] (!%p1977_p6)  ;;  %v1978_v21 = vld [vmem:[#allocation6] ss:$0 sm:$0xff] (!%p1977_p6) }
  0x47   : > { %s416_s14 = scalar_select %p415_p8, %s2456_s27, 1 }
  0x48   : > { %443 = sbr.rel (%p1977_p6) target bundleno = 390 (0x186), region = 64  ;;  %v449_v2 = vsel (!%p1977_p6), %vm448_vm0, %v444_v0, 0.0  ;;  %v452_v3 = vsel (!%p1977_p6), %vm448_vm0, %v445_v1, 0.0  ;;  %v1979_v23 = vld [vmem:[#allocation6 + $0x1] ss:$0 sm:$0xff] (!%p1977_p6) }
  0x49   : > { %s2023_s16 = sshll.u32 %s416_s14, 4  ;;  %s2026_s26 = sshll.u32 %s416_s14, 5  ;;  %450 = vadd.xlane.f32.xlu0 (!%p1977_p6), %v449_v2 }
  0x4a   : > { %s2635_s15 = scalar_lea.vmem %s2947_s3, %s2023_s16  ;;  %s2640_s19 = scalar_lea.vmem %s2948_s4, %s2023_s16 }
  0x4b   : > { %s2645_s11 = scalar_lea.vmem %s2949_s5, %s2023_s16  ;;  %s2650_s13 = scalar_lea.vmem %s2950_s6, %s2026_s26 }
  0x4c   : > { %s1976_s24 = sshll.u32 %s416_s14, 3 }
  0x4d   : > { %s2655_s12 = scalar_lea.vmem %s2951_s7, %s1976_s24  ;;  %453 = vadd.xlane.f32.xlu0 (!%p1977_p6), %v452_v3 }
  0xd6   : > { %v451_v4 = vpop.xlane.xlu0 %450 }
  0xd7   : > { %v456_v5 = vmul.f32 0.03125, %v451_v4 }
  0xd9   : > { %v458_v6 = vsub.f32 %v444_v0, %v456_v5 }
  0xda   : > { %v454_v7 = vpop.xlane.xlu0 %453 }
  0xdb   : > { %v457_v8 = vmul.f32 0.03125, %v454_v7  ;;  %v460_v9 = vmul.f32 %v458_v6, %v458_v6 }
  0xdd   : > { %v459_v10 = vsub.f32 %v445_v1, %v457_v8  ;;  %v462_v11 = vsel %vm448_vm0, %v460_v9, 0.0 }
  0xde   : > { %463 = vadd.xlane.f32.xlu1 %v462_v11 }
  0xdf   : > { %v461_v12 = vmul.f32 %v459_v10, %v459_v10 }
  0xe1   : > { %v465_v13 = vsel %vm448_vm0, %v461_v12, 0.0 }
  0xe2   : > { %466 = vadd.xlane.f32.xlu1 %v465_v13 }
 0x16b   : > { %v464_v14 = vpop.xlane.xlu1 %463 }
 0x16c   : > { %v468_v15 = vmul.f32 0.03125, %v464_v14 }
 0x16e   : > { %v470_v16 = vadd.f32 1e-12, %v468_v15 }
 0x16f   : > { %v467_v17 = vpop.xlane.xlu1 %466 }
 0x170   : > { %2275 = vrsqrt.f32 %v470_v16  ;;  %v469_v18 = vmul.f32 0.03125, %v467_v17 }
 0x172   : > { %v471_v19 = vadd.f32 1e-12, %v469_v18 }
 0x174   : > { %2277 = vrsqrt.f32 %v471_v19 }
 0x17a   : > { %v2276_v20 = vpop.eup %2275 }
 0x17b   : > { %v474_v22 = vmul.f32 %v2276_v20, %v458_v6 }
 0x17d   : > { %v480_v24 = vmul.f32 %v1978_v21, %v474_v22 }
 0x17e   : > { %v2278_v25 = vpop.eup %2277 }
 0x17f   : > { %v486_v26 = vadd.f32 %v1979_v23, %v480_v24  ;;  %v475_v27 = vmul.f32 %v2278_v25, %v459_v10 }
 0x181   : > { %488 = vst.msk [vmem:[#allocation2] sm:$0xff] %vm448_vm0, %v486_v26  ;;  %v481_v28 = vmul.f32 %v1978_v21, %v475_v27 }
 0x183   : > { %v487_v29 = vadd.f32 %v1979_v23, %v481_v28 }
 0x185   : > { %489 = vst.msk [vmem:[#allocation2 + $0x8] sm:$0xff] %vm448_vm0, %v487_v29 }
 0x186 PF: > { %v2294_v30 = vld [vmem:[%s2635_s15] sm:$0xff]   ;;  %v2470_v31 = vmov 0.0   ;;  %v2295_v32 = vld [vmem:[%s2635_s15 + $0x8] sm:$0xff]   ;;  %vm2471_vm1 = vmmov 0   ;;  %vm521_vm2 = vcmask 261120   ;;  %s2472_s14 = smov 120   ;;  %v568_v3 = vlaneseq }
 0x187   : > { %2073 = vmatprep.subr.bf16.mxu0 %v2470_v31  ;;  %2081 = vmatprep.subr.bf16.mxu1 %v2470_v31  ;;  %v1980_v36 = vld [vmem:[%s2655_s12] ss:$0 sm:$0xff]  ;;  %s2473_s16 = smov 96   ;;  %s2474_s26 = smov 80   ;;  %vm575_vm3 = vcmask 64512   ;;  %vm639_vm4 = vcmask 1043456  }
 0x188   : > { %2074 = vmatpush3.bf16.msra.mxu0 %v2294_v30  ;;  %2077 = vmatprep.mubr.msk.bf16.mxu0 %vm2471_vm1, %v2470_v31  ;;  %v2670_v33 = vld [vmem:[#allocation2] sm:$0xff]  ;;  %s2475_s15 = smov 88   ;;  %s2476_s17 = smov 72   ;;  %v569_v4 = vshrl.u32 %v568_v3, 7  ;;  %vm1026_vm5 = vcmask 130048   ;;  %vm1028_vm6 = vcmask 195584  }
 0x189   : > { %2075 = vmatprep.subr.bf16.mxu0 %v2470_v31  ;;  %2083 = vmatprep.mubr.msk.bf16.mxu1 %vm2471_vm1, %v2470_v31  ;;  %s2477_s18 = smov 112   ;;  %s2478_s20 = smov 104   ;;  %v566_v6 = vld [vmem:[%s2945_s1] sm:$0x3]  ;;  %vm1715_vm7 = vcmask 523264  }
 0x18a   : > { %v570_v5 = vsub.s32 0, %v569_v4  ;;  %v1033_v29 = vsub.s32 1, %v569_v4  ;;  %s2479_s23 = smov 56   ;;  %s2480_s24 = smov 64  }
 0x18b   : > { %s2481_s25 = smov 48   ;;  %s2482_s10 = smov 40  }
 0x18c   : > { %v2672_v34 = vld [vmem:[#allocation2 + $0x8] sm:$0xff]  ;;  %2076 = vmatpush3.bf16.msra.mxu0 %v2295_v32  ;;  %v571_v7 = vrot.slane %v566_v6, %v570_v5  ;;  %p2018_p4 = scmp.ne.s32.totalorder %s2456_s27, 1 }
 0x18d   : > { %v492_v35 = vpack.c.bf16 %v2672_v34, %v2670_v33  ;;  %2087 = vmatprep.subr.bf16.mxu0 %v2470_v31  ;;  %vm1809_vm8 = vcmask (!%p2018_p4), 1040384   ;;  %vm1811_vm9 = vcmask (!%p2018_p4), 254976  }
 0x18f   : > { %2078 = vmatmul.mubr.msk.bf16.vlgmr.msra.gmra.mrb[0].mxu0 %vm521_vm2, %v492_v35 }
 0x190   : > { %2089 = vmatprep.mubr.msk.bf16.mxu0 %vm2471_vm1, %v2470_v31 }
 0x262   : > { %v559_v37 = vpop.f32.mrb[0].mxu0 }
 0x263   : > { %v560_v38 = vadd.f32 %v1980_v36, %v559_v37  ;;  %v2079_v39 = vpop.f32.mrb[1].mxu0 }
 0x264   : > { %v562_v40 = vpop.f32.mrb[2].mxu0 }
 0x265   : > { %v2684_v41 = vpack.c.bf16 %v560_v38, %v560_v38  ;;  %v2080_v42 = vpop.f32.mrb[3].mxu0  ;;  %v563_v43 = vadd.f32 %v1980_v36, %v562_v40  ;;  %v1034_v36 = vrot.slane %v566_v6, %v1033_v29 }
 0x267   : > { %683 = vrot.lane.b32.xlu1 %v2684_v41, %s2472_s14  ;;  %573 = vrot.lane.b32.xlu0 %v2684_v41, %s2473_s16  ;;  %v2692_v44 = vpack.c.bf16 %v563_v43, %v563_v43 }
 0x26b   : > { %795 = vrot.lane.b32.xlu1 %v2684_v41, %s2474_s26  ;;  %685 = vrot.lane.b32.xlu0 %v2684_v41, %s2475_s15 }
 0x26f   : > { %905 = vrot.lane.b32.xlu1 %v2684_v41, %s2476_s17  ;;  %793 = vrot.lane.b32.xlu0 %v2684_v41, %s2477_s18 }
 0x273   : > { %903 = vrot.lane.b32.xlu0 %v2684_v41, %s2478_s20  ;;  %1036 = vrot.lane.b32.xlu1 %v2692_v44, %s2473_s16  ;;  %s2484_s16 = smov 16  }
 0x277   : > { %1146 = vrot.lane.b32.xlu0 %v2692_v44, %s2475_s15  ;;  %1144 = vrot.lane.b32.xlu1 %v2692_v44, %s2472_s14  ;;  %s2483_s14 = smov 8  }
 0x27b   : > { %1256 = vrot.lane.b32.xlu0 %v2692_v44, %s2474_s26  ;;  %1254 = vrot.lane.b32.xlu1 %v2692_v44, %s2477_s18  ;;  %s2485_s26 = smov 24  }
 0x27f   : > { %1366 = vrot.lane.b32.xlu0 %v2692_v44, %s2476_s17  ;;  %1364 = vrot.lane.b32.xlu1 %v2692_v44, %s2478_s20 }
 0x2d9   : > { %v574_v45 = vpop.permute.xlu0 %573  ;;  %v684_v48 = vpop.permute.xlu1 %683 }
 0x2da   : > { %v580_v46 = vsel %vm575_vm3, %v574_v45, 0 }
 0x2db   : > { %2082 = vmatpush3.bf16.xpose.msra.mxu1 %v580_v46 }
 0x2dc   : > { %2093 = vmatprep.subr.bf16.mxu1 %v2470_v31 }
 0x2dd   : > { %v686_v47 = vpop.permute.xlu0 %685  ;;  %v796_v50 = vpop.permute.xlu1 %795 }
 0x2de   : > { %v691_v49 = vsel %vm575_vm3, %v686_v47, 0  ;;  %v801_v51 = vsel %vm575_vm3, %v796_v50, 0 }
 0x2e1   : > { %v906_v52 = vpop.permute.xlu1 %905  ;;  %v794_v53 = vpop.permute.xlu0 %793 }
 0x2e2   : > { %2084 = vmatmul.mubr.msk.bf16.vlgmr.msra.gmra.mrb[0].mxu1 %vm575_vm3, %v2684_v41  ;;  %v911_v54 = vsel %vm575_vm3, %v906_v52, 0 }
 0x2e3   : > { %2094 = vmatpush3.bf16.xpose.msra.mxu1 %v691_v49  ;;  %2095 = vmatprep.mubr.msk.bf16.mxu1 %vm2471_vm1, %v2470_v31 }
 0x2e4   : > { %2105 = vmatprep.subr.bf16.mxu1 %v2470_v31 }
 0x2e5   : > { %v1037_v55 = vpop.permute.xlu1 %1036  ;;  %v904_v56 = vpop.permute.xlu0 %903 }
 0x2e6   : > { %v1042_v57 = vsel %vm575_vm3, %v1037_v55, 0 }
 0x2e9   : > { %v1147_v58 = vpop.permute.xlu0 %1146  ;;  %v1145_v61 = vpop.permute.xlu1 %1144 }
 0x2ea   : > { %2096 = vmatmul.mubr.msk.bf16.vlgmr.msra.gmra.mrb[4].mxu1 %vm575_vm3, %v684_v48  ;;  %v1152_v59 = vsel %vm575_vm3, %v1147_v58, 0 }
 0x2eb   : > { %2106 = vmatpush3.bf16.xpose.msra.mxu1 %v801_v51  ;;  %2107 = vmatprep.mubr.msk.bf16.mxu1 %vm2471_vm1, %v2470_v31 }
 0x2ec   : > { %2117 = vmatprep.subr.bf16.mxu1 %v2470_v31 }
 0x2ed   : > { %v1257_v60 = vpop.permute.xlu0 %1256  ;;  %v1255_v0 = vpop.permute.xlu1 %1254 }
 0x2ee   : > { %v1262_v62 = vsel %vm575_vm3, %v1257_v60, 0 }
 0x2f1   : > { %v1367_v63 = vpop.permute.xlu0 %1366  ;;  %v1365_v2 = vpop.permute.xlu1 %1364 }
 0x2f2   : > { %2108 = vmatmul.mubr.msk.bf16.vlgmr.msra.gmra.mrb[8].mxu1 %vm575_vm3, %v794_v53  ;;  %v1372_v1 = vsel %vm575_vm3, %v1367_v63, 0 }
 0x2f3   : > { %2118 = vmatpush3.bf16.xpose.msra.mxu1 %v911_v54  ;;  %2119 = vmatprep.mubr.msk.bf16.mxu1 %vm2471_vm1, %v2470_v31 }
 0x2f4   : > { %2129 = vmatprep.subr.bf16.mxu1 %v2470_v31 }
 0x2fa   : > { %2120 = vmatmul.mubr.msk.bf16.vlgmr.msra.gmra.mrb[12].mxu1 %vm575_vm3, %v904_v56 }
 0x2fb   : > { %2130 = vmatpush3.bf16.xpose.msra.mxu1 %v1042_v57  ;;  %2131 = vmatprep.mubr.msk.bf16.mxu1 %vm2471_vm1, %v2470_v31 }
 0x2fc   : > { %2141 = vmatprep.subr.bf16.mxu1 %v2470_v31 }
 0x302   : > { %2132 = vmatmul.mubr.msk.bf16.vlgmr.msra.gmra.mrb[16].mxu1 %vm575_vm3, %v2692_v44 }
 0x303   : > { %2142 = vmatpush3.bf16.xpose.msra.mxu1 %v1152_v59  ;;  %2143 = vmatprep.mubr.msk.bf16.mxu1 %vm2471_vm1, %v2470_v31 }
 0x304   : > { %2153 = vmatprep.subr.bf16.mxu1 %v2470_v31 }
 0x30a   : > { %2144 = vmatmul.mubr.msk.bf16.vlgmr.msra.gmra.mrb[20].mxu1 %vm575_vm3, %v1145_v61 }
 0x30b   : > { %2154 = vmatpush3.bf16.xpose.msra.mxu1 %v1262_v62  ;;  %2155 = vmatprep.mubr.msk.bf16.mxu1 %vm2471_vm1, %v2470_v31 }
 0x30c   : > { %2165 = vmatprep.subr.bf16.mxu1 %v2470_v31 }
 0x312   : > { %2156 = vmatmul.mubr.msk.bf16.vlgmr.msra.gmra.mrb[24].mxu1 %vm575_vm3, %v1255_v0 }
 0x313   : > { %2166 = vmatpush3.bf16.xpose.msra.mxu1 %v1372_v1  ;;  %2167 = vmatprep.mubr.msk.bf16.mxu1 %vm2471_vm1, %v2470_v31 }
 0x314   : > { %2177 = vmatprep.subr.bf16.mxu1 %v2470_v31 }
 0x31a   : > { %2168 = vmatmul.mubr.msk.bf16.vlgmr.msra.gmra.mrb[28].mxu1 %vm575_vm3, %v1365_v2 }
 0x31b   : > { %2181 = vmatprep.mubr.msk.bf16.mxu1 %vm2471_vm1, %v2470_v31 }
 0x3b5   : > { %v616_v8 = vpop.f32.mrb[0].mxu1 }
 0x3b6   : > { %v2747_v9 = vadd.f32 %v616_v8, %v571_v7  ;;  %v2085_v10 = vpop.f32.mrb[1].mxu1 }
 0x3b7   : > { %v619_v11 = vpop.f32.mrb[2].mxu1 }
 0x3b8   : > { %v2086_v12 = vpop.f32.mrb[3].mxu1  ;;  %v622_v13 = vsel %vm575_vm3, %v2747_v9, -inf }
 0x3b9   : > { %623 = vmax.xlane.f32.xlu0 %v622_v13 }
 0x3bd   : > { %v727_v14 = vpop.f32.mrb[4].mxu1 }
 0x3be   : > { %v728_v15 = vadd.f32 %v727_v14, %v571_v7  ;;  %v2097_v16 = vpop.f32.mrb[5].mxu1 }
 0x3bf   : > { %v730_v17 = vpop.f32.mrb[6].mxu1 }
 0x3c0   : > { %v2098_v18 = vpop.f32.mrb[7].mxu1  ;;  %v733_v19 = vsel %vm575_vm3, %v728_v15, -inf }
 0x3c1   : > { %734 = vmax.xlane.f32.xlu1 %v733_v19 }
 0x3c5   : > { %v837_v20 = vpop.f32.mrb[8].mxu1 }
 0x3c6   : > { %v838_v21 = vadd.f32 %v837_v20, %v571_v7  ;;  %v2109_v22 = vpop.f32.mrb[9].mxu1 }
 0x3c7   : > { %v840_v23 = vpop.f32.mrb[10].mxu1 }
 0x3c8   : > { %v2110_v24 = vpop.f32.mrb[11].mxu1  ;;  %v843_v25 = vsel %vm575_vm3, %v838_v21, -inf }
 0x3c9   : > { %844 = vmax.xlane.f32.xlu0 %v843_v25 }
 0x3cd   : > { %v947_v26 = vpop.f32.mrb[12].mxu1 }
 0x3ce   : > { %v2753_v27 = vadd.f32 %v947_v26, %v571_v7  ;;  %v2121_v28 = vpop.f32.mrb[13].mxu1 }
 0x3cf   : > { %v950_v30 = vpop.f32.mrb[14].mxu1 }
 0x3d0   : > { %v2122_v32 = vpop.f32.mrb[15].mxu1  ;;  %v953_v35 = vsel %vm575_vm3, %v2753_v27, -inf }
 0x3d1   : > { %954 = vmax.xlane.f32.xlu0 %v953_v35 }
 0x3d5   : > { %v1078_v37 = vpop.f32.mrb[16].mxu1 }
 0x3d6   : > { %v2757_v38 = vadd.f32 %v1078_v37, %v1034_v36  ;;  %v2133_v39 = vpop.f32.mrb[17].mxu1 }
 0x3d7   : > { %v1081_v40 = vpop.f32.mrb[18].mxu1 }
 0x3d8   : > { %v2134_v42 = vpop.f32.mrb[19].mxu1  ;;  %v1084_v43 = vsel %vm575_vm3, %v2757_v38, -inf }
 0x3d9   : > { %1085 = vmax.xlane.f32.xlu1 %v1084_v43 }
 0x3dd   : > { %v1188_v45 = vpop.f32.mrb[20].mxu1 }
 0x3de   : > { %v2761_v46 = vadd.f32 %v1188_v45, %v1034_v36  ;;  %v2145_v47 = vpop.f32.mrb[21].mxu1 }
 0x3df   : > { %v1191_v48 = vpop.f32.mrb[22].mxu1 }
 0x3e0   : > { %v2146_v49 = vpop.f32.mrb[23].mxu1  ;;  %v1194_v50 = vsel %vm575_vm3, %v2761_v46, -inf }
 0x3e1   : > { %1195 = vmax.xlane.f32.xlu0 %v1194_v50 }
 0x3e5   : > { %v1298_v51 = vpop.f32.mrb[24].mxu1 }
 0x3e6   : > { %v1299_v52 = vadd.f32 %v1298_v51, %v1034_v36  ;;  %v2157_v53 = vpop.f32.mrb[25].mxu1 }
 0x3e7   : > { %v1301_v54 = vpop.f32.mrb[26].mxu1 }
 0x3e8   : > { %v2158_v55 = vpop.f32.mrb[27].mxu1  ;;  %v1304_v56 = vsel %vm575_vm3, %v1299_v52, -inf }
 0x3e9   : > { %1305 = vmax.xlane.f32.xlu1 %v1304_v56 }
 0x3ed   : > { %v1408_v57 = vpop.f32.mrb[28].mxu1 }
 0x3ee   : > { %v2169_v58 = vpop.f32.mrb[29].mxu1  ;;  %v2770_v61 = vadd.f32 %v1408_v57, %v1034_v36 }
 0x3ef   : > { %v1411_v59 = vpop.f32.mrb[30].mxu1 }
 0x3f0   : > { %v2170_v60 = vpop.f32.mrb[31].mxu1  ;;  %v1414_v62 = vsel %vm575_vm3, %v2770_v61, -inf }
 0x3f7   : > { %745 = vrot.lane.b32.xlu0 %v2684_v41, %s2479_s23 }
 0x3fa   : > { %634 = vrot.lane.b32.xlu1 %v2684_v41, %s2480_s24 }
 0x416   : > { %1415 = vmax.xlane.f32.xlu0 %v1414_v62 }
 0x446   : > { %v624_v63 = vpop.xlane.xlu0 %623 }
 0x447   : > { %v625_v0 = vsub.f32 %v2747_v9, %v624_v63 }
 0x449   : > { %v626_v1 = vmul.f32 1.442695, %v625_v0 }
 0x44b   : > { %2304 = vpow2.f32 %v626_v1 }
 0x44e   : > { %v735_v2 = vpop.xlane.xlu1 %734 }
 0x44f   : > { %v736_v3 = vsub.f32 %v728_v15, %v735_v2 }
 0x451   : > { %v737_v4 = vmul.f32 1.442695, %v736_v3 }
 0x453   : > { %2306 = vpow2.f32 %v737_v4 }
 0x455   : > { %v2775_v5 = vpop.eup %2304 }
 0x456   : > { %v845_v6 = vpop.xlane.xlu0 %844  ;;  %v628_v7 = vsel %vm575_vm3, %v2775_v5, 0.0 }
 0x457   : > { %v846_v8 = vsub.f32 %v838_v21, %v845_v6  ;;  %629 = vadd.xlane.f32.xlu1 %v628_v7 }
 0x459   : > { %v847_v10 = vmul.f32 1.442695, %v846_v8 }
 0x45b   : > { %2308 = vpow2.f32 %v847_v10 }
 0x45d   : > { %v2779_v11 = vpop.eup %2306 }
 0x45e   : > { %v739_v9 = vsel %vm575_vm3, %v2779_v11, 0.0  ;;  %v955_v17 = vpop.xlane.xlu0 %954 }
 0x45f   : > { %740 = vadd.xlane.f32.xlu0 %v739_v9  ;;  %v956_v19 = vsub.f32 %v2753_v27, %v955_v17 }
 0x461   : > { %v957_v20 = vmul.f32 1.442695, %v956_v19 }
 0x463   : > { %2310 = vpow2.f32 %v957_v20 }
 0x465   : > { %v2783_v12 = vpop.eup %2308 }
 0x466   : > { %v849_v13 = vsel %vm575_vm3, %v2783_v12, 0.0  ;;  %v1086_v14 = vpop.xlane.xlu1 %1085 }
 0x467   : > { %850 = vadd.xlane.f32.xlu1 %v849_v13  ;;  %v1087_v21 = vsub.f32 %v2757_v38, %v1086_v14 }
 0x469   : > { %v1088_v24 = vmul.f32 1.442695, %v1087_v21 }
 0x46b   : > { %2312 = vpow2.f32 %v1088_v24 }
 0x46d   : > { %v2311_v28 = vpop.eup %2310 }
 0x46e   : > { %v1196_v22 = vpop.xlane.xlu0 %1195  ;;  %v959_v29 = vsel %vm575_vm3, %v2311_v28, 0.0 }
 0x46f   : > { %v1197_v23 = vsub.f32 %v2761_v46, %v1196_v22 }
 0x472   : > { %v746_v38 = vpop.permute.xlu0 %745 }
 0x473   : > { %v751_v51 = vsel %vm639_vm4, %v746_v38, 0 }
 0x475   : > { %855 = vrot.lane.b32.xlu0 %v2684_v41, %s2481_s25  ;;  %v2797_v30 = vpop.eup %2312 }
 0x476   : > { %v1306_v15 = vpop.xlane.xlu1 %1305  ;;  %v1090_v32 = vsel %vm575_vm3, %v2797_v30, 0.0 }
 0x477   : > { %v1307_v25 = vsub.f32 %v1299_v52, %v1306_v15 }
 0x478   : > { %965 = vrot.lane.b32.xlu1 %v2684_v41, %s2482_s10  ;;  %v1198_v41 = vmul.f32 1.442695, %v1197_v23 }
 0x479   : > { %v1308_v26 = vmul.f32 1.442695, %v1307_v25 }
 0x47a   : > { %v635_v16 = vpop.permute.xlu1 %634  ;;  %2314 = vpow2.f32 %v1198_v41 }
 0x47b   : > { %v641_v18 = vsel %vm639_vm4, %v635_v16, 0  ;;  %2316 = vpow2.f32 %v1308_v26 }
 0x47c   : > { %2088 = vmatpush3.bf16.msra.mxu0 %v641_v18 }
 0x47d   : > { %2099 = vmatprep.subr.bf16.mxu0 %v2470_v31 }
 0x484   : > { %v2799_v27 = vpop.eup %2314 }
 0x485   : > { %v2803_v35 = vpop.eup %2316  ;;  %v1200_v36 = vsel %vm575_vm3, %v2799_v27, 0.0 }
 0x486   : > { %v1310_v37 = vsel %vm575_vm3, %v2803_v35, 0.0 }
 0x494   : > { %960 = vadd.xlane.f32.xlu0 %v959_v29 }
 0x498   : > { %1091 = vadd.xlane.f32.xlu0 %v1090_v32 }
 0x49c   : > { %1201 = vadd.xlane.f32.xlu1 %v1200_v36  ;;  %1311 = vadd.xlane.f32.xlu0 %v1310_v37 }
 0x4a3   : > { %v1416_v39 = vpop.xlane.xlu0 %1415 }
 0x4a4   : > { %v1417_v40 = vsub.f32 %v2770_v61, %v1416_v39 }
 0x4a6   : > { %v1418_v42 = vmul.f32 1.442695, %v1417_v40 }
 0x4a8   : > { %2318 = vpow2.f32 %v1418_v42 }
 0x4ad   : > { %1206 = vrot.lane.b32.xlu1 %v2692_v44, %s2479_s23 }
 0x4b1   : > { %1316 = vrot.lane.b32.xlu1 %v2692_v44, %s2481_s25 }
 0x4b2   : > { %v2814_v43 = vpop.eup %2318 }
 0x4b3   : > { %v1420_v45 = vsel %vm575_vm3, %v2814_v43, 0.0 }
 0x4b4   : > { %1421 = vadd.xlane.f32.xlu0 %v1420_v45 }
 0x4b5   : > { %1426 = vrot.lane.b32.xlu1 %v2692_v44, %s2482_s10 }
 0x4ca   : > { %1096 = vrot.lane.b32.xlu0 %v2692_v44, %s2480_s24 }
 0x4e4   : > { %v630_v46 = vpop.xlane.xlu1 %629 }
 0x4e5   : > { %2320 = vrcp.f32 %v630_v46 }
 0x4ec   : > { %v741_v47 = vpop.xlane.xlu0 %740 }
 0x4ed   : > { %2322 = vrcp.f32 %v741_v47 }
 0x4ef   : > { %v2321_v48 = vpop.eup %2320 }
 0x4f0   : > { %v632_v49 = vmul.f32 %v2321_v48, %v2775_v5  ;;  %v856_v54 = vpop.permute.xlu0 %855 }
 0x4f1   : > { %v861_v56 = vsel %vm639_vm4, %v856_v54, 0 }
 0x4f2   : > { %v633_v50 = vpack.c.bf16 %v632_v49, %v632_v49 }
 0x4f4   : > { %2090 = vmatmul.mubr.msk.bf16.vlgmr.msra.gmra.mrb[4].mxu0 %vm575_vm3, %v633_v50  ;;  %v851_v52 = vpop.xlane.xlu1 %850 }
 0x4f5   : > { %2100 = vmatpush3.bf16.msra.mxu0 %v751_v51  ;;  %2324 = vrcp.f32 %v851_v52  ;;  %2101 = vmatprep.mubr.msk.bf16.mxu0 %vm2471_vm1, %v2470_v31  ;;  %v2296_v51 = vld [vmem:[%s2640_s19] sm:$0xff]  }
 0x4f6   : > { %2111 = vmatprep.subr.bf16.mxu0 %v2470_v31  ;;  %2178 = vmatpush3.bf16.msra.mxu1 %v2296_v51 }
 0x4f7   : > { %v2323_v44 = vpop.eup %2322  ;;  %2179 = vmatprep.subr.bf16.mxu1 %v2470_v31 }
 0x4f8   : > { %v743_v53 = vmul.f32 %v2323_v44, %v2779_v11  ;;  %v966_v59 = vpop.permute.xlu1 %965 }
 0x4f9   : > { %v971_v61 = vsel %vm639_vm4, %v966_v59, 0 }
 0x4fa   : > { %v744_v55 = vpack.c.bf16 %v743_v53, %v743_v53 }
 0x4fc   : > { %2102 = vmatmul.mubr.msk.bf16.vlgmr.msra.gmra.mrb[8].mxu0 %vm575_vm3, %v744_v55  ;;  %v2297_v55 = vld [vmem:[%s2640_s19 + $0x8] sm:$0xff]  }
 0x4fd   : > { %2112 = vmatpush3.bf16.msra.mxu0 %v861_v56  ;;  %2113 = vmatprep.mubr.msk.bf16.mxu0 %vm2471_vm1, %v2470_v31 }
 0x4fe   : > { %2123 = vmatprep.subr.bf16.mxu0 %v2470_v31  ;;  %2180 = vmatpush3.bf16.msra.mxu1 %v2297_v55 }
 0x4ff   : > { %v2325_v57 = vpop.eup %2324  ;;  %2193 = vmatprep.subr.bf16.mxu1 %v2470_v31 }
 0x500   : > { %v853_v58 = vmul.f32 %v2325_v57, %v2783_v12 }
 0x502   : > { %v854_v60 = vpack.c.bf16 %v853_v58, %v853_v58 }
 0x504   : > { %2114 = vmatmul.mubr.msk.bf16.vlgmr.msra.gmra.mrb[12].mxu0 %vm575_vm3, %v854_v60 }
 0x505   : > { %2124 = vmatpush3.bf16.msra.mxu0 %v971_v61  ;;  %2125 = vmatprep.mubr.msk.bf16.mxu0 %vm2471_vm1, %v2470_v31 }
 0x506   : > { %2135 = vmatprep.subr.bf16.mxu0 %v2470_v31 }
 0x521   : > { %v961_v62 = vpop.xlane.xlu0 %960 }
 0x522   : > { %2326 = vrcp.f32 %v961_v62 }
 0x525   : > { %v1092_v2 = vpop.xlane.xlu0 %1091 }
 0x526   : > { %2328 = vrcp.f32 %v1092_v2 }
 0x529   : > { %v1202_v3 = vpop.xlane.xlu1 %1201  ;;  %v1312_v4 = vpop.xlane.xlu0 %1311 }
 0x52a   : > { %2330 = vrcp.f32 %v1202_v3 }
 0x52b   : > { %2332 = vrcp.f32 %v1312_v4 }
 0x52c   : > { %v2327_v63 = vpop.eup %2326 }
 0x52d   : > { %v963_v0 = vmul.f32 %v2327_v63, %v2311_v28  ;;  %v1207_v11 = vpop.permute.xlu1 %1206 }
 0x52e   : > { %v1212_v13 = vsel %vm639_vm4, %v1207_v11, 0 }
 0x52f   : > { %v964_v1 = vpack.c.bf16 %v963_v0, %v963_v0 }
 0x530   : > { %v2329_v5 = vpop.eup %2328 }
 0x531   : > { %2126 = vmatmul.mubr.msk.bf16.vlgmr.msra.gmra.mrb[16].mxu0 %vm575_vm3, %v964_v1  ;;  %v1094_v7 = vmul.f32 %v2329_v5, %v2797_v30  ;;  %v1317_v15 = vpop.permute.xlu1 %1316 }
 0x532   : > { %2137 = vmatprep.mubr.msk.bf16.mxu0 %vm2471_vm1, %v2470_v31  ;;  %v1322_v18 = vsel %vm639_vm4, %v1317_v15, 0 }
 0x533   : > { %v1095_v9 = vpack.c.bf16 %v1094_v7, %v1094_v7 }
 0x534   : > { %v2331_v12 = vpop.eup %2330 }
 0x535   : > { %v1204_v14 = vmul.f32 %v2331_v12, %v2799_v27  ;;  %v2333_v17 = vpop.eup %2332  ;;  %v1427_v20 = vpop.permute.xlu1 %1426 }
 0x536   : > { %v1314_v19 = vmul.f32 %v2333_v17, %v2803_v35  ;;  %v1432_v23 = vsel %vm639_vm4, %v1427_v20, 0 }
 0x537   : > { %v1205_v16 = vpack.c.bf16 %v1204_v14, %v1204_v14 }
 0x538   : > { %v1315_v21 = vpack.c.bf16 %v1314_v19, %v1314_v19 }
 0x541   : > { %v1422_v6 = vpop.xlane.xlu0 %1421 }
 0x542   : > { %2334 = vrcp.f32 %v1422_v6 }
 0x545   : > { %v1097_v8 = vpop.permute.xlu0 %1096 }
 0x546   : > { %v1102_v10 = vsel %vm639_vm4, %v1097_v8, 0 }
 0x547   : > { %2136 = vmatpush3.bf16.msra.mxu0 %v1102_v10 }
 0x548   : > { %2147 = vmatprep.subr.bf16.mxu0 %v2470_v31 }
 0x54a   : > { %2138 = vmatmul.mubr.msk.bf16.vlgmr.msra.gmra.mrb[20].mxu0 %vm575_vm3, %v1095_v9 }
 0x54b   : > { %2148 = vmatpush3.bf16.msra.mxu0 %v1212_v13  ;;  %2149 = vmatprep.mubr.msk.bf16.mxu0 %vm2471_vm1, %v2470_v31 }
 0x54c   : > { %2159 = vmatprep.subr.bf16.mxu0 %v2470_v31  ;;  %v2335_v22 = vpop.eup %2334 }
 0x54d   : > { %v1424_v24 = vmul.f32 %v2335_v22, %v2814_v43 }
 0x54f   : > { %v1425_v25 = vpack.c.bf16 %v1424_v24, %v1424_v24 }
 0x552   : > { %2150 = vmatmul.mubr.msk.bf16.vlgmr.msra.gmra.mrb[24].mxu0 %vm575_vm3, %v1205_v16 }
 0x553   : > { %2160 = vmatpush3.bf16.msra.mxu0 %v1322_v18  ;;  %2161 = vmatprep.mubr.msk.bf16.mxu0 %vm2471_vm1, %v2470_v31  ;;  %v2000_v18 = vld [vmem:[%s2655_s12 + $0x1] ss:$0 sm:$0xff] }
 0x554   : > { %2171 = vmatprep.subr.bf16.mxu0 %v2470_v31 }
 0x55a   : > { %2162 = vmatmul.mubr.msk.bf16.vlgmr.msra.gmra.mrb[28].mxu0 %vm575_vm3, %v1315_v21 }
 0x55b   : > { %2172 = vmatpush3.bf16.msra.mxu0 %v1432_v23  ;;  %2173 = vmatprep.mubr.msk.bf16.mxu0 %vm2471_vm1, %v2470_v31 }
 0x55c   : > { %2185 = vmatprep.subr.bf16.mxu0 %v2470_v31 }
 0x562   : > { %2174 = vmatmul.mubr.msk.bf16.vlgmr.msra.gmra.mrb[32].mxu0 %vm575_vm3, %v1425_v25 }
 0x563   : > { %2189 = vmatprep.mubr.msk.bf16.mxu0 %vm2471_vm1, %v2470_v31 }
 0x5c7   : > { %v677_v41 = vpop.f32.mrb[4].mxu0 }
 0x5c8   : > { %v2091_v26 = vpop.f32.mrb[5].mxu0 }
 0x5c9   : > { %v680_v28 = vpop.f32.mrb[6].mxu0 }
 0x5ca   : > { %v2092_v29 = vpop.f32.mrb[7].mxu0 }
 0x5cf   : > { %v787_v30 = vpop.f32.mrb[8].mxu0 }
 0x5d0   : > { %v2103_v27 = vpop.f32.mrb[9].mxu0 }
 0x5d1   : > { %v790_v32 = vpop.f32.mrb[10].mxu0 }
 0x5d2   : > { %v2104_v35 = vpop.f32.mrb[11].mxu0 }
 0x5d7   : > { %v897_v36 = vpop.f32.mrb[12].mxu0 }
 0x5d8   : > { %v2115_v37 = vpop.f32.mrb[13].mxu0 }
 0x5d9   : > { %v900_v38 = vpop.f32.mrb[14].mxu0 }
 0x5da   : > { %v2116_v39 = vpop.f32.mrb[15].mxu0 }
 0x604   : > { %v1007_v40 = vpop.f32.mrb[16].mxu0 }
 0x605   : > { %v2127_v42 = vpop.f32.mrb[17].mxu0 }
 0x606   : > { %v1010_v43 = vpop.f32.mrb[18].mxu0 }
 0x607   : > { %v2128_v45 = vpop.f32.mrb[19].mxu0 }
 0x61d   : > { %v1138_v46 = vpop.f32.mrb[20].mxu0 }
 0x61e   : > { %v2139_v47 = vpop.f32.mrb[21].mxu0 }
 0x61f   : > { %v1141_v48 = vpop.f32.mrb[22].mxu0 }
 0x620   : > { %v2140_v49 = vpop.f32.mrb[23].mxu0 }
 0x625   : > { %v1248_v50 = vpop.f32.mrb[24].mxu0 }
 0x626   : > { %v2279_v52 = vpack.i.bf16 %v1248_v50, %v787_v30  ;;  %v2151_v44 = vpop.f32.mrb[25].mxu0  ;;  %v2004_v50 = vld [vmem:[%s2655_s12 + $0x4] ss:$0 sm:$0xff] }
 0x627   : > { %v1251_v53 = vpop.f32.mrb[26].mxu0 }
 0x628   : > { %2280 = vrot.lane.b32.xlu1 %v2279_v52, %s2483_s14  ;;  %v2152_v54 = vpop.f32.mrb[27].mxu0 }
 0x629   : > { %v2005_v54 = vld [vmem:[%s2655_s12 + $0x5] ss:$0 sm:$0xff] }
 0x62d   : > { %v1358_v56 = vpop.f32.mrb[28].mxu0 }
 0x62e   : > { %v2284_v57 = vpack.i.bf16 %v1358_v56, %v897_v36  ;;  %v2163_v58 = vpop.f32.mrb[29].mxu0 }
 0x62f   : > { %v1361_v59 = vpop.f32.mrb[30].mxu0 }
 0x630   : > { %2285 = vrot.lane.b32.xlu1 %v2284_v57, %s2484_s16  ;;  %v2164_v60 = vpop.f32.mrb[31].mxu0  ;;  %v2300_v59 = vld [vmem:[%s2650_s13] sm:$0xff]  }
 0x631   : > { %v2301_v60 = vld [vmem:[%s2650_s13 + $0x8] sm:$0xff]  }
 0x635   : > { %v1468_v61 = vpop.f32.mrb[32].mxu0 }
 0x636   : > { %v2289_v62 = vpack.i.bf16 %v1468_v61, %v1007_v40  ;;  %v2175_v63 = vpop.f32.mrb[33].mxu0  ;;  %v2299_v40 = vld [vmem:[%s2645_s11 + $0x8] sm:$0xff]   ;;  %v2302_v61 = vld [vmem:[%s2650_s13 + $0x10] sm:$0xff]  }
 0x637   : > { %v1471_v0 = vpop.f32.mrb[34].mxu0  ;;  %v2006_v63 = vld [vmem:[%s2655_s12 + $0x2] ss:$0 sm:$0xff] }
 0x638   : > { %2290 = vrot.lane.b32.xlu0 %v2289_v62, %s2485_s26  ;;  %v2176_v1 = vpop.f32.mrb[35].mxu0  ;;  %v2303_v62 = vld [vmem:[%s2650_s13 + $0x18] sm:$0xff]  }
 0x69a   : > { %v2281_v2 = vpop.permute.xlu1 %2280 }
 0x69b   : > { %v2283_v4 = vunpack.i.h.bf16 %v2281_v2  ;;  %v2282_v5 = vunpack.i.l.bf16 %v2281_v2 }
 0x69d   : > { %v1486_v10 = vsel %vm575_vm3, %v1138_v46, %v2283_v4  ;;  %v1025_v11 = vsel %vm575_vm3, %v677_v41, %v2282_v5 }
 0x6a2   : > { %v2286_v3 = vpop.permute.xlu1 %2285 }
 0x6a3   : > { %v2288_v6 = vunpack.i.h.bf16 %v2286_v3  ;;  %v2287_v7 = vunpack.i.l.bf16 %v2286_v3 }
 0x6a5   : > { %v1487_v13 = vsel %vm1026_vm5, %v1486_v10, %v2288_v6  ;;  %v1027_v14 = vsel %vm1026_vm5, %v1025_v11, %v2287_v7 }
 0x6aa   : > { %v2291_v8 = vpop.permute.xlu0 %2290 }
 0x6ab   : > { %v2293_v9 = vunpack.i.h.bf16 %v2291_v8  ;;  %v2292_v12 = vunpack.i.l.bf16 %v2291_v8 }
 0x6ad   : > { %v1488_v15 = vsel %vm1028_vm6, %v1487_v13, %v2293_v9  ;;  %v1029_v16 = vsel %vm1028_vm6, %v1027_v14, %v2292_v12 }
 0x6ae   : > { %v1489_v17 = vpack.c.bf16 %v1488_v15, %v1029_v16 }
 0x6b0   : > { %2182 = vmatmul.mubr.msk.bf16.vlgmr.msra.gmra.mrb[32].mxu1 %vm521_vm2, %v1489_v17 }
 0x6b1   : > { %2201 = vmatprep.mubr.msk.bf16.mxu1 %vm2471_vm1, %v2470_v31  ;;  %2194 = vmatpush3.bf16.msra.mxu1 %v2300_v59 }
 0x6b2   : > { %2195 = vmatprep.subr.bf16.mxu1 %v2470_v31 }
 0x6b5   : > { %2196 = vmatpush3.bf16.msra.mxu1 %v2301_v60 }
 0x6b6   : > { %2197 = vmatprep.subr.bf16.mxu1 %v2470_v31 }
 0x6b9   : > { %2198 = vmatpush3.bf16.msra.mxu1 %v2302_v61 }
 0x6ba   : > { %2199 = vmatprep.subr.bf16.mxu1 %v2470_v31 }
 0x6bd   : > { %2200 = vmatpush3.bf16.msra.mxu1 %v2303_v62 }
 0x783   : > { %v1547_v19 = vpop.f32.mrb[32].mxu1 }
 0x784   : > { %v1548_v20 = vadd.f32 %v2000_v18, %v1547_v19  ;;  %v2183_v21 = vpop.f32.mrb[33].mxu1 }
 0x785   : > { %v1550_v22 = vpop.f32.mrb[34].mxu1 }
 0x786   : > { %v1551_v23 = vadd.f32 %v2000_v18, %v1550_v22  ;;  %v2184_v24 = vpop.f32.mrb[35].mxu1  ;;  %v1554_v25 = vadd.f32 %v1548_v20, %v2670_v33 }
 0x787   : > { %v2010_v24 = vld [vmem:[%s2655_s12 + $0x3] ss:$0 sm:$0xff] }
 0x788   : > { %v1556_v41 = vsel %vm521_vm2, %v1554_v25, 0.0  ;;  %v1555_v26 = vadd.f32 %v1551_v23, %v2672_v34  ;;  %v2298_v34 = vld [vmem:[%s2645_s11] sm:$0xff]  }
 0x789   : > { %1557 = vadd.xlane.f32.xlu1 %v1556_v41  ;;  %2186 = vmatpush3.bf16.msra.mxu0 %v2298_v34 }
 0x78a   : > { %v1559_v28 = vsel %vm521_vm2, %v1555_v26, 0.0  ;;  %2187 = vmatprep.subr.bf16.mxu0 %v2470_v31 }
 0x78b   : > { %1560 = vadd.xlane.f32.xlu0 %v1559_v28 }
 0x78d   : > { %2188 = vmatpush3.bf16.msra.mxu0 %v2299_v40 }
 0x816   : > { %v1558_v29 = vpop.xlane.xlu1 %1557 }
 0x817   : > { %v1563_v30 = vmul.f32 0.03125, %v1558_v29 }
 0x818   : > { %v1561_v27 = vpop.xlane.xlu0 %1560 }
 0x819   : > { %v1565_v32 = vsub.f32 %v1554_v25, %v1563_v30  ;;  %v1564_v35 = vmul.f32 0.03125, %v1561_v27 }
 0x81b   : > { %v1566_v36 = vsub.f32 %v1555_v26, %v1564_v35  ;;  %v1567_v37 = vmul.f32 %v1565_v32, %v1565_v32 }
 0x81d   : > { %v1569_v38 = vsel %vm521_vm2, %v1567_v37, 0.0  ;;  %v1568_v33 = vmul.f32 %v1566_v36, %v1566_v36 }
 0x81e   : > { %1570 = vadd.xlane.f32.xlu0 %v1569_v38 }
 0x81f   : > { %v1572_v39 = vsel %vm521_vm2, %v1568_v33, 0.0 }
 0x820   : > { %1573 = vadd.xlane.f32.xlu1 %v1572_v39 }
 0x8ab   : > { %v1571_v42 = vpop.xlane.xlu0 %1570 }
 0x8ac   : > { %v1575_v43 = vmul.f32 0.03125, %v1571_v42 }
 0x8ad   : > { %v1574_v45 = vpop.xlane.xlu1 %1573 }
 0x8ae   : > { %v1577_v46 = vadd.f32 1e-12, %v1575_v43  ;;  %v1576_v47 = vmul.f32 0.03125, %v1574_v45 }
 0x8b0   : > { %2336 = vrsqrt.f32 %v1577_v46  ;;  %v1578_v48 = vadd.f32 1e-12, %v1576_v47 }
 0x8b2   : > { %2338 = vrsqrt.f32 %v1578_v48 }
 0x8ba   : > { %v2337_v49 = vpop.eup %2336 }
 0x8bb   : > { %v1581_v51 = vmul.f32 %v2337_v49, %v1565_v32 }
 0x8bc   : > { %v2339_v52 = vpop.eup %2338 }
 0x8bd   : > { %v1587_v44 = vmul.f32 %v2004_v50, %v1581_v51  ;;  %v1582_v53 = vmul.f32 %v2339_v52, %v1566_v36 }
 0x8bf   : > { %v1588_v55 = vmul.f32 %v2004_v50, %v1582_v53  ;;  %v1593_v56 = vadd.f32 %v2005_v54, %v1587_v44  ;;  %v2016_v53 = vld [vmem:[%s2655_s12 + $0x6] ss:$0 sm:$0xff] }
 0x8c1   : > { %v1594_v57 = vadd.f32 %v2005_v54, %v1588_v55 }
 0x8c3   : > { %v1595_v58 = vpack.c.bf16 %v1594_v57, %v1593_v56 }
 0x8c5   : > { %2190 = vmatmul.mubr.msk.bf16.vlgmr.msra.gmra.mrb[36].mxu0 %vm521_vm2, %v1595_v58 }
 0x998   : > { %v1653_v0 = vpop.f32.mrb[36].mxu0 }
 0x999   : > { %v1654_v1 = vadd.f32 %v2006_v63, %v1653_v0  ;;  %v2191_v2 = vpop.f32.mrb[37].mxu0 }
 0x99a   : > { %v1656_v3 = vpop.f32.mrb[38].mxu0 }
 0x99b   : > { %v1660_v4 = vmul.f32 %v1654_v1, %v1654_v1  ;;  %v1657_v5 = vadd.f32 %v2006_v63, %v1656_v3  ;;  %v2192_v6 = vpop.f32.mrb[39].mxu0 }
 0x99d   : > { %v1662_v7 = vmul.f32 %v1660_v4, %v1654_v1  ;;  %v1661_v8 = vmul.f32 %v1657_v5, %v1657_v5 }
 0x99f   : > { %v1664_v10 = vmul.f32 0.044715, %v1662_v7  ;;  %v1663_v11 = vmul.f32 %v1661_v8, %v1657_v5 }
 0x9a1   : > { %v1666_v9 = vadd.f32 %v1664_v10, %v1654_v1  ;;  %v1665_v12 = vmul.f32 0.044715, %v1663_v11 }
 0x9a3   : > { %v1668_v13 = vmul.f32 0.7978846, %v1666_v9  ;;  %v1667_v14 = vadd.f32 %v1665_v12, %v1657_v5 }
 0x9a5   : > { %2340 = vtanh.f32 %v1668_v13  ;;  %v1669_v31 = vmul.f32 0.7978846, %v1667_v14 }
 0x9a7   : > { %2342 = vtanh.f32 %v1669_v31 }
 0x9af   : > { %v2341_v15 = vpop.eup %2340 }
 0x9b0   : > { %v1672_v16 = vadd.f32 1.0, %v2341_v15 }
 0x9b1   : > { %v2343_v17 = vpop.eup %2342 }
 0x9b2   : > { %v1674_v18 = vmul.f32 0.5, %v1672_v16  ;;  %v1673_v19 = vadd.f32 1.0, %v2343_v17 }
 0x9b4   : > { %v1675_v20 = vmul.f32 0.5, %v1673_v19  ;;  %v1676_v21 = vmul.f32 %v1674_v18, %v1654_v1 }
 0x9b6   : > { %v1677_v22 = vmul.f32 %v1675_v20, %v1657_v5 }
 0x9b8   : > { %v1678_v23 = vpack.c.bf16 %v1677_v22, %v1676_v21 }
 0x9ba   : > { %2202 = vmatmul.mubr.msk.bf16.vlgmr.msra.gmra.mrb[36].mxu1 %vm1715_vm7, %v1678_v23 }
 0xa8d   : > { %v1753_v25 = vpop.f32.mrb[36].mxu1 }
 0xa8e   : > { %v1754_v41 = vadd.f32 %v2010_v24, %v1753_v25  ;;  %v2203_v26 = vpop.f32.mrb[37].mxu1 }
 0xa8f   : > { %v1756_v28 = vpop.f32.mrb[38].mxu1 }
 0xa90   : > { %v1757_v29 = vadd.f32 %v2010_v24, %v1756_v28  ;;  %v2204_v30 = vpop.f32.mrb[39].mxu1  ;;  %v1760_v27 = vadd.f32 %v1754_v41, %v1593_v56  ;;  %v2017_v56 = vld [vmem:[%s2655_s12 + $0x7] ss:$0 sm:$0xff] }
 0xa92   : > { %v1762_v32 = vsel %vm521_vm2, %v1760_v27, 0.0  ;;  %v1761_v35 = vadd.f32 %v1757_v29, %v1594_v57 }
 0xa93   : > { %1763 = vadd.xlane.f32.xlu0 %v1762_v32 }
 0xa94   : > { %v1765_v36 = vsel %vm521_vm2, %v1761_v35, 0.0 }
 0xa95   : > { %1766 = vadd.xlane.f32.xlu1 %v1765_v36 }
 0xb20   : > { %v1764_v37 = vpop.xlane.xlu0 %1763 }
 0xb21   : > { %v1768_v38 = vmul.f32 0.03125, %v1764_v37 }
 0xb22   : > { %v1767_v33 = vpop.xlane.xlu1 %1766 }
 0xb23   : > { %v1770_v39 = vsub.f32 %v1760_v27, %v1768_v38  ;;  %v1769_v34 = vmul.f32 0.03125, %v1767_v33 }
 0xb25   : > { %v1771_v40 = vsub.f32 %v1761_v35, %v1769_v34  ;;  %v1772_v42 = vmul.f32 %v1770_v39, %v1770_v39 }
 0xb27   : > { %v1774_v43 = vsel %vm521_vm2, %v1772_v42, 0.0  ;;  %v1773_v45 = vmul.f32 %v1771_v40, %v1771_v40 }
 0xb28   : > { %1775 = vadd.xlane.f32.xlu0 %v1774_v43 }
 0xb29   : > { %v1777_v46 = vsel %vm521_vm2, %v1773_v45, 0.0 }
 0xb2a   : > { %1778 = vadd.xlane.f32.xlu1 %v1777_v46 }
 0xbb5   : > { %v1776_v47 = vpop.xlane.xlu0 %1775 }
 0xbb6   : > { %v1780_v48 = vmul.f32 0.03125, %v1776_v47 }
 0xbb7   : > { %v1779_v49 = vpop.xlane.xlu1 %1778 }
 0xbb8   : > { %v1782_v50 = vadd.f32 1e-12, %v1780_v48  ;;  %v1781_v51 = vmul.f32 0.03125, %v1779_v49 }
 0xbba   : > { %2344 = vrsqrt.f32 %v1782_v50  ;;  %v1783_v52 = vadd.f32 1e-12, %v1781_v51 }
 0xbbc   : > { %2346 = vrsqrt.f32 %v1783_v52 }
 0xbc4   : > { %v2345_v44 = vpop.eup %2344 }
 0xbc5   : > { %v1786_v54 = vmul.f32 %v2345_v44, %v1770_v39 }
 0xbc6   : > { %v2347_v55 = vpop.eup %2346 }
 0xbc7   : > { %v1792_v57 = vmul.f32 %v2016_v53, %v1786_v54  ;;  %v1787_v58 = vmul.f32 %v2347_v55, %v1771_v40  ;;  %1805 = sbr.rel (%p2018_p4) target bundleno = 3025 (0xbd1), region = 68 }
 0xbc9   : > { %v1798_v59 = vadd.f32 %v2017_v56, %v1792_v57  ;;  %v1793_v60 = vmul.f32 %v2016_v53, %v1787_v58 }
 0xbcb   : > { %1800 = vst.msk [vmem:[#allocation2] sm:$0xff] %vm521_vm2, %v1798_v59  ;;  %v1799_v61 = vadd.f32 %v2017_v56, %v1793_v60 }
 0xbcd   : > { %1801 = vst.msk [vmem:[#allocation2 + $0x8] sm:$0xff] %vm521_vm2, %v1799_v61  ;;  %v1807_v62 = vrot.slane (!%p2018_p4), %v1799_v61, 7 }
 0xbcf   : > { %v1810_v63 = vsel %vm1809_vm8, %v1798_v59, %v1807_v62 }
 0xbd0   : > { %1812 = vst.msk [vmem:[#allocation8] sm:$0x3] %vm1811_vm9, %v1810_v63 }
 0xbd1 PF: > { %p2909_p9 = scmp.eq.s32.totalorder %s1959_s30, 1  ;;  %s2486_s11 = smov [#allocation8]  }
 0xbd2   : > { %s1822_s13 = sshll.u32 %s2486_s11, 4  ;;  %s1823_s13 = int_to_ptr.vmem [resolvable:$true] %s1822_s13 }
 0xbd3   : > { %s2404_s12 = scalar_lea.vmem %s1823_s13, 32  ;;  %p2411_p13 = scmp.lt.s32.totalorder %s1823_s13, %s1823_s13 }
 0xbd4   : > { %p2405_p10 = scmp.ne.s32.totalorder %s1823_s13, %s2404_s12  ;;  %p2412_p0 = scmp.lt.s32.totalorder %s2404_s12, %s2404_s12 }
 0xbd6   : > { %p2406_p11 = pnand %p2405_p10, %p2909_p9  ;;  %p2413_p1 = por %p2412_p0, %p2411_p13 }
 0xbd8   : > { %p2407_p12 = pneg %p2406_p11 }
 0xbda   : > { %p2414_p2 = pnand %p2413_p1, %p2407_p12 }
 0xbdc   : > { %2417 = shalt.err (!%p2414_p2)
}
 0xbdd   : > { %s2418_s30 = scalar_lea.hbm %s2952_s8, 32 }
 0xbde   : > { %p2419_p5 = scmp.ne.s32.totalorder %s2952_s8, %s2418_s30  ;;  %p2424_p8 = scmp.lt.u32.totalorder %s2418_s30, %s2952_s8 }
 0xbe0   : > { %p2420_p7 = pnand %p2419_p5, %p2909_p9 }
 0xbe2   : > { %p2421_p3 = pneg %p2420_p7 }
 0xbe4   : > { %p2426_p6 = pnand %p2424_p8, %p2421_p3 }
 0xbe6   : > { %2429 = shalt.err (!%p2426_p6)
}
 0xbe7   : > { %2214 = dma.vmem_to_hbm [thread:$0]  (%p2909_p9), %s1823_s13, 32, %s2952_s8, [#allocation5]  }
 0xbe8   : > { %2451 = dma.done.wait (%p2909_p9), [#allocation5], 32  }
 0xbe9   : > { %2453 = vsyncadd (%p2909_p9), [#allocation5], 4294967264 }
 0xbea PF: > { %s21_s29 = sadd.s32 1, %s2464_s29   ;;  %s2962_s27 = smov %s2460_s28 }
 0xbeb   : > { %p18_p4 = scmp.ge.s32.totalorder %s21_s29, 4   ;;  %s2963_s28 = smov %s2965_s9 }
 0xbed   :  { %20 = sbr.rel (!%p18_p4) target bundleno = 4 (0x4), region = 113 }
 0xbf4   :  { %1835 = vsyncpa [#allocation4], 1 }
 0xbf5   :  { %1837 = vsyncpa [#allocation4 + $0x1], 1 }
 0xbf6   :  { %1838 = vsyncpa [#allocation7], 1 }
 0xbf7   :  { %1839 = vsyncpa [#allocation5], 1 }
 0xbf8   :  { %1841 = vsyncpa [#allocation5 + $0x1], 1 }

</bundles_post_ra>
